<compile_context>
chip_gen: v7x
topology: tpu7x:2x2x1
jax: 0.10.0
libtpu: 0.0.40
codegen_flags: <defaults>
</compile_context>

<pallas_src>
import math

import jax
import jax.numpy as jnp
from jax import lax
from jax.experimental import pallas as pl
from jax.experimental.pallas import tpu as pltpu

# ----------------------------- config (small) ------------------------------
BATCH = 2
SEQ = 8
HIDDEN = 32
NUM_HEADS = 4
HEAD_DIM = HIDDEN // NUM_HEADS
INTERMEDIATE = 64
NUM_LAYERS = 2
VOCAB = 100
MAX_POS = 40           # position table size = MAX_POS + 2
TYPE_VOCAB = 2
PAD_TOKEN_ID = 1
LN_EPS = 1e-5
TOKENS = BATCH * SEQ   # flattened token count (one block for the whole batch)

# rows of the packed small-parameter table (one sublane row per tensor)
ROW_BQKV, ROW_BO, ROW_LN1G, ROW_LN1B, ROW_BI, ROW_B2, ROW_LN2G, ROW_LN2B = range(8)
SMALL_ROWS = 8
SMALL_COLS = 3 * HIDDEN        # widest packed row (fused QKV bias = 96)


# ------------------------------- kernel helpers -----------------------------
def _layer_norm(x, gamma, beta):
    mu = jnp.mean(x, axis=-1, keepdims=True)
    var = jnp.mean(jnp.square(x - mu), axis=-1, keepdims=True)
    return (x - mu) * lax.rsqrt(var + LN_EPS) * gamma + beta


def _gelu_exact(x):
    # nn.GELU() default: exact erf formulation (kept for parity with PyTorch).
    return 0.5 * x * (1.0 + lax.erf(x * 0.7071067811865476))


# ------------------------------- fused kernel -------------------------------
def encoder_kernel(emb_ref, eln_ref, bias_ref, wqkv_ref, wo_ref, wi_ref,
                   w2_ref, small_ref, o_ref, ctx_ref):
    H, I, HD = HIDDEN, INTERMEDIATE, HEAD_DIM

    # Embeddings LayerNorm seeds the VMEM-resident activation.
    x = _layer_norm(emb_ref[...], eln_ref[0:1, :], eln_ref[1:2, :])

    # Layer-invariant additive attention bias, built once in the wrapper:
    #   -1000*(1-mask) for padded keys (matches the PyTorch module) and -1e30
    #   for cross-batch pairs so fused-batch (T,T) attention == per-batch (S,S).
    bias = bias_ref[...]                                       # (T, T)

    def row(l, r, n):
        return small_ref[l, r:r + 1, 0:n]                      # (1, n)

    for l in range(NUM_LAYERS):                                # static unroll, L=2
        # --- self-attention: fused QKV projection (one MXU op) ---------------
        qkv = (jnp.dot(x, wqkv_ref[l], preferred_element_type=jnp.float32)
               + row(l, ROW_BQKV, 3 * H))                      # (T, 3H); Q pre-scaled
        for h in range(NUM_HEADS):                             # static, independent writes
            q = qkv[:, h * HD:(h + 1) * HD]                    # (T, HD)
            k = qkv[:, H + h * HD:H + (h + 1) * HD]
            v = qkv[:, 2 * H + h * HD:2 * H + (h + 1) * HD]
            s = jnp.dot(q, k.T, preferred_element_type=jnp.float32) + bias
            s = s - jnp.max(s, axis=-1, keepdims=True)
            p = jnp.exp(s)
            p = p / jnp.sum(p, axis=-1, keepdims=True)         # exact softmax
            ctx_ref[:, h * HD:(h + 1) * HD] = jnp.dot(
                p, v, preferred_element_type=jnp.float32)
        attn = (jnp.dot(ctx_ref[...], wo_ref[l],
                        preferred_element_type=jnp.float32) + row(l, ROW_BO, H))

        # --- self-output: residual + LayerNorm (post-norm) -------------------
        h1 = _layer_norm(attn + x, row(l, ROW_LN1G, H), row(l, ROW_LN1B, H))

        # --- intermediate + output (FFN) --------------------------------------
        inter = _gelu_exact(
            jnp.dot(h1, wi_ref[l], preferred_element_type=jnp.float32)
            + row(l, ROW_BI, I))
        ffn = (jnp.dot(inter, w2_ref[l], preferred_element_type=jnp.float32)
               + row(l, ROW_B2, H))
        x = _layer_norm(ffn + h1, row(l, ROW_LN2G, H), row(l, ROW_LN2B, H))

    o_ref[...] = x.astype(o_ref.dtype)


# ------------------------------ pallas wrapper -------------------------------
def _full_spec(shape):
    return pl.BlockSpec(shape, lambda i: (0,) * len(shape))


def fused_encoder(emb_sum, emb_ln, bias, sp):
    T, H = emb_sum.shape
    I = INTERMEDIATE
    L = sp["wqkv"].shape[0]

    in_specs = [
        _full_spec((T, H)),                       # summed embeddings
        _full_spec((2, H)),                       # embedding LN gamma/beta
        _full_spec((T, T)),                       # precomputed attention bias
        _full_spec((L, H, 3 * H)),                # fused Wqkv
        _full_spec((L, H, H)),                    # Wo
        _full_spec((L, H, I)),                    # Wi
        _full_spec((L, I, H)),                    # W2
        _full_spec((L, SMALL_ROWS, SMALL_COLS)),  # packed small params
    ]
    return pl.pallas_call(
        encoder_kernel,
        out_shape=jax.ShapeDtypeStruct((T, H), jnp.float32),
        grid=(1,),                                 # single step; layers loop in-kernel
        in_specs=in_specs,
        out_specs=pl.BlockSpec((T, H), lambda i: (0, 0)),
        scratch_shapes=[pltpu.VMEM((T, H), jnp.float32)],      # per-head ctx buffer
        compiler_params=pltpu.CompilerParams(dimension_semantics=("arbitrary",)),
    )(emb_sum, emb_ln, bias,
      sp["wqkv"], sp["wo"], sp["wi"], sp["w2"], sp["small"])


# ------------------------------ params ---------------------------------------
def init_params(key):
    """Parameters in PyTorch layout (nn.Linear weight = (out, in))."""
    def normal(k, shape, scale=0.02):
        return (scale * jax.random.normal(k, shape)).astype(jnp.float32)

    keys = jax.random.split(key, 3 + NUM_LAYERS)
    emb = {
        "word": normal(keys[0], (VOCAB, HIDDEN)),
        "pos": normal(keys[1], (MAX_POS + 2, HIDDEN)),
        "type": normal(keys[2], (TYPE_VOCAB, HIDDEN)),
        "ln_g": jnp.ones((HIDDEN,), jnp.float32),
        "ln_b": jnp.zeros((HIDDEN,), jnp.float32),
    }
    layers = []
    for li in range(NUM_LAYERS):
        lk = jax.random.split(keys[3 + li], 12)
        layers.append({
            "wq": normal(lk[0], (HIDDEN, HIDDEN)), "bq": normal(lk[1], (HIDDEN,)),
            "wk": normal(lk[2], (HIDDEN, HIDDEN)), "bk": normal(lk[3], (HIDDEN,)),
            "wv": normal(lk[4], (HIDDEN, HIDDEN)), "bv": normal(lk[5], (HIDDEN,)),
            "wo": normal(lk[6], (HIDDEN, HIDDEN)), "bo": normal(lk[7], (HIDDEN,)),
            "ln1_g": jnp.ones((HIDDEN,), jnp.float32),
            "ln1_b": jnp.zeros((HIDDEN,), jnp.float32),
            "wi": normal(lk[8], (INTERMEDIATE, HIDDEN)), "bi": normal(lk[9], (INTERMEDIATE,)),
            "w2": normal(lk[10], (HIDDEN, INTERMEDIATE)), "b2": normal(lk[11], (HIDDEN,)),
            "ln2_g": jnp.ones((HIDDEN,), jnp.float32),
            "ln2_b": jnp.zeros((HIDDEN,), jnp.float32),
        })
    return {"emb": emb, "layers": layers}


def prepare_stacked(layers):
    """Convert per-layer PyTorch-layout params to kernel layout, stacked over L."""
    H, HD, I = HIDDEN, HEAD_DIM, INTERMEDIATE
    scale = 1.0 / math.sqrt(HD)

    wqkv, wo, wi, w2, small = [], [], [], [], []
    for p in layers:
        # nn.Linear weight (out,in) -> (in,out); fold 1/sqrt(HD) into Q cols+bias.
        wqkv.append(jnp.concatenate(
            [p["wq"].T * scale, p["wk"].T, p["wv"].T], axis=1))      # (H, 3H)
        wo.append(p["wo"].T)                                         # (H, H)
        wi.append(p["wi"].T)                                         # (H, I)
        w2.append(p["w2"].T)                                         # (I, H)
        rows = [
            jnp.concatenate([p["bq"] * scale, p["bk"], p["bv"]]),    # bqkv (3H)
            p["bo"], p["ln1_g"], p["ln1_b"],                         # H each
            p["bi"],                                                 # I
            p["b2"], p["ln2_g"], p["ln2_b"],                         # H each
        ]
        small.append(jnp.stack(
            [jnp.pad(r, (0, SMALL_COLS - r.shape[0])) for r in rows]))
    return {
        "wqkv": jnp.stack(wqkv), "wo": jnp.stack(wo),
        "wi": jnp.stack(wi), "w2": jnp.stack(w2),
        "small": jnp.stack(small),
    }


# ------------------------------ forward ---------------------------------------
def roberta_forward(emb, stacked, input_ids, token_type_ids, position_ids,
                    attention_mask):
    # embedding gathers (glue, plain JAX — no clean tiny-Pallas gather equivalent)
    we = jnp.take(emb["word"], input_ids, axis=0)                       # (B,S,H)
    te = jnp.take(emb["type"], token_type_ids, axis=0)                  # (B,S,H)
    pe = jnp.take(emb["pos"], PAD_TOKEN_ID + 1 + position_ids, axis=0)  # module adds pad+1
    emb_sum = (we + te + pe).reshape(TOKENS, HIDDEN)
    emb_ln = jnp.stack([emb["ln_g"], emb["ln_b"]])                      # (2, H)

    # Layer-invariant additive attention bias, hoisted out of the kernel:
    #   same-batch pairs get -1000*(1-mask_key) exactly like the PyTorch module;
    #   cross-batch pairs get -1e30 so their softmax weight is exactly 0 even
    #   for large trained-weight score magnitudes.
    mask_flat = attention_mask.astype(jnp.float32).reshape(TOKENS)
    batch_id = jnp.arange(TOKENS) // SEQ
    same_batch = batch_id[:, None] == batch_id[None, :]
    bias = jnp.where(same_batch,
                     -1000.0 * (1.0 - mask_flat)[None, :],
                     jnp.float32(-1e30)).astype(jnp.float32)            # (T, T)

    out = fused_encoder(emb_sum, emb_ln, bias, stacked)
    # module returns (sequence_output, {}, {}); we return the sequence output
    return out.reshape(BATCH, SEQ, HIDDEN)


# -------------------------------- main ---------------------------------------
if __name__ == "__main__":
    key = jax.random.PRNGKey(0)
    pkey, ikey = jax.random.split(key)

    params = init_params(pkey)
    stacked = prepare_stacked(params["layers"])

    input_ids = jax.random.randint(ikey, (BATCH, SEQ), 0, VOCAB, dtype=jnp.int32)
    token_type_ids = jnp.zeros((BATCH, SEQ), jnp.int32)
    attention_mask = jnp.ones((BATCH, SEQ), jnp.float32).at[1, SEQ - 3:].set(0.0)
    # position_ids are a caller input to the module (which itself adds
    # pad_token_id + 1); we use mask-aware positions (pads -> 0, valid 1..n),
    # giving in-range embedding rows [2, 2+SEQ].
    mask_i = attention_mask.astype(jnp.int32)
    position_ids = jnp.cumsum(mask_i, axis=1) * mask_i

    fwd = jax.jit(roberta_forward)
    seq_out = fwd(params["emb"], stacked, input_ids, token_type_ids,
                  position_ids, attention_mask)
    seq_out = jax.block_until_ready(seq_out)

    assert seq_out.shape == (BATCH, SEQ, HIDDEN)
    assert bool(jnp.all(jnp.isfinite(seq_out)))
    print("KERNEL_OK")
</pallas_src>

<mosaic_0001>
module attributes {stable_mosaic.version = 11 : i64} {
  func.func @encoder_kernel(%arg0: i32, %arg1: memref<16x32xf32, #tpu.memory_space<vmem>>, %arg2: memref<2x32xf32, #tpu.memory_space<vmem>>, %arg3: memref<16x16xf32, #tpu.memory_space<vmem>>, %arg4: memref<2x32x96xf32, #tpu.memory_space<vmem>>, %arg5: memref<2x32x32xf32, #tpu.memory_space<vmem>>, %arg6: memref<2x32x64xf32, #tpu.memory_space<vmem>>, %arg7: memref<2x64x32xf32, #tpu.memory_space<vmem>>, %arg8: memref<2x8x96xf32, #tpu.memory_space<vmem>>, %arg9: memref<16x32xf32, #tpu.memory_space<vmem>>, %arg10: memref<16x32xf32, #tpu.memory_space<vmem>>) attributes {dimension_semantics = [#tpu.dimension_semantics<arbitrary>], iteration_bounds = array<i64: 1>, scalar_prefetch = 0 : i64, scratch_operands = 1 : i64, tpu.core_type = #tpu.core_type<tc>, window_params = [{pipeline_mode = #tpu.pipeline_mode<synchronous>, transform_indices = @transform_0, window_bounds = array<i64: 16, 32>}, {pipeline_mode = #tpu.pipeline_mode<synchronous>, transform_indices = @transform_1, window_bounds = array<i64: 2, 32>}, {pipeline_mode = #tpu.pipeline_mode<synchronous>, transform_indices = @transform_2, window_bounds = array<i64: 16, 16>}, {pipeline_mode = #tpu.pipeline_mode<synchronous>, transform_indices = @transform_3, window_bounds = array<i64: 2, 32, 96>}, {pipeline_mode = #tpu.pipeline_mode<synchronous>, transform_indices = @transform_4, window_bounds = array<i64: 2, 32, 32>}, {pipeline_mode = #tpu.pipeline_mode<synchronous>, transform_indices = @transform_5, window_bounds = array<i64: 2, 32, 64>}, {pipeline_mode = #tpu.pipeline_mode<synchronous>, transform_indices = @transform_6, window_bounds = array<i64: 2, 64, 32>}, {pipeline_mode = #tpu.pipeline_mode<synchronous>, transform_indices = @transform_7, window_bounds = array<i64: 2, 8, 96>}, {pipeline_mode = #tpu.pipeline_mode<synchronous>, transform_indices = @transform_8, window_bounds = array<i64: 16, 32>}]} {
    %c0 = arith.constant 0 : index
    %c0_0 = arith.constant 0 : index
    %0 = vector.load %arg1[%c0, %c0_0] : memref<16x32xf32, #tpu.memory_space<vmem>>, vector<16x32xf32>
    %c0_1 = arith.constant 0 : index
    %c0_2 = arith.constant 0 : index
    %1 = vector.load %arg2[%c0_1, %c0_2] : memref<2x32xf32, #tpu.memory_space<vmem>>, vector<1x32xf32>
    %c1 = arith.constant 1 : index
    %c0_3 = arith.constant 0 : index
    %2 = vector.load %arg2[%c1, %c0_3] : memref<2x32xf32, #tpu.memory_space<vmem>>, vector<1x32xf32>
    %cst = arith.constant dense<0.000000e+00> : vector<16xf32>
    %3 = vector.multi_reduction <add>, %0, %cst [1] : vector<16x32xf32> to vector<16xf32>
    %4 = vector.shape_cast %3 : vector<16xf32> to vector<16x1xf32>
    %cst_4 = arith.constant 3.200000e+01 : f32
    %5 = vector.broadcast %cst_4 : f32 to vector<16x1xf32>
    %6 = arith.divf %4, %5 : vector<16x1xf32>
    %7 = vector.broadcast %6 : vector<16x1xf32> to vector<16x32xf32>
    %8 = arith.subf %0, %7 : vector<16x32xf32>
    %9 = arith.mulf %8, %8 : vector<16x32xf32>
    %cst_5 = arith.constant dense<0.000000e+00> : vector<16xf32>
    %10 = vector.multi_reduction <add>, %9, %cst_5 [1] : vector<16x32xf32> to vector<16xf32>
    %11 = vector.shape_cast %10 : vector<16xf32> to vector<16x1xf32>
    %cst_6 = arith.constant 3.200000e+01 : f32
    %12 = vector.broadcast %cst_6 : f32 to vector<16x1xf32>
    %13 = arith.divf %11, %12 : vector<16x1xf32>
    %14 = vector.broadcast %6 : vector<16x1xf32> to vector<16x32xf32>
    %15 = arith.subf %0, %14 : vector<16x32xf32>
    %cst_7 = arith.constant 9.99999974E-6 : f32
    %16 = vector.broadcast %cst_7 : f32 to vector<16x1xf32>
    %17 = arith.addf %13, %16 : vector<16x1xf32>
    %18 = math.rsqrt %17 : vector<16x1xf32>
    %19 = vector.broadcast %18 : vector<16x1xf32> to vector<16x32xf32>
    %20 = arith.mulf %15, %19 : vector<16x32xf32>
    %21 = vector.broadcast %1 : vector<1x32xf32> to vector<16x32xf32>
    %22 = arith.mulf %20, %21 : vector<16x32xf32>
    %23 = vector.broadcast %2 : vector<1x32xf32> to vector<16x32xf32>
    %24 = arith.addf %22, %23 : vector<16x32xf32>
    %c0_8 = arith.constant 0 : index
    %c0_9 = arith.constant 0 : index
    %25 = vector.load %arg3[%c0_8, %c0_9] : memref<16x16xf32, #tpu.memory_space<vmem>>, vector<16x16xf32>
    %c0_10 = arith.constant 0 : index
    %c0_11 = arith.constant 0 : index
    %c0_12 = arith.constant 0 : index
    %26 = vector.load %arg4[%c0_10, %c0_11, %c0_12] : memref<2x32x96xf32, #tpu.memory_space<vmem>>, vector<1x32x96xf32>
    %27 = vector.shape_cast %26 : vector<1x32x96xf32> to vector<32x96xf32>
    %cst_13 = arith.constant dense<0.000000e+00> : vector<16x96xf32>
    %28 = tpu.matmul %24, %27, %cst_13 {dimension_numbers = #tpu.dot_dimension_numbers<[1], [0], [0], [1], [0, 0, 1, 1], [], []>} : vector<16x32xf32>, vector<32x96xf32>, vector<16x96xf32> -> vector<16x96xf32>
    %c0_14 = arith.constant 0 : index
    %c0_15 = arith.constant 0 : index
    %c0_16 = arith.constant 0 : index
    %29 = vector.load %arg8[%c0_14, %c0_15, %c0_16] : memref<2x8x96xf32, #tpu.memory_space<vmem>>, vector<1x1x96xf32>
    %30 = vector.shape_cast %29 : vector<1x1x96xf32> to vector<1x96xf32>
    %31 = vector.broadcast %30 : vector<1x96xf32> to vector<16x96xf32>
    %32 = arith.addf %28, %31 : vector<16x96xf32>
    %33 = vector.extract_strided_slice %32 {offsets = [0, 0], sizes = [16, 8], strides = [1, 1]} : vector<16x96xf32> to vector<16x8xf32>
    %34 = vector.extract_strided_slice %32 {offsets = [0, 32], sizes = [16, 8], strides = [1, 1]} : vector<16x96xf32> to vector<16x8xf32>
    %35 = vector.extract_strided_slice %32 {offsets = [0, 64], sizes = [16, 8], strides = [1, 1]} : vector<16x96xf32> to vector<16x8xf32>
    %36 = tpu.transpose %34, [1, 0] : vector<16x8xf32> -> vector<8x16xf32>
    %cst_17 = arith.constant dense<0.000000e+00> : vector<16x16xf32>
    %37 = tpu.matmul %33, %36, %cst_17 {dimension_numbers = #tpu.dot_dimension_numbers<[1], [0], [0], [1], [0, 0, 1, 1], [], []>} : vector<16x8xf32>, vector<8x16xf32>, vector<16x16xf32> -> vector<16x16xf32>
    %38 = arith.addf %37, %25 : vector<16x16xf32>
    %cst_18 = arith.constant dense<0xFF800000> : vector<16xf32>
    %39 = vector.multi_reduction <maximumf>, %38, %cst_18 [1] : vector<16x16xf32> to vector<16xf32>
    %40 = vector.shape_cast %39 : vector<16xf32> to vector<16x1xf32>
    %41 = vector.broadcast %40 : vector<16x1xf32> to vector<16x16xf32>
    %42 = arith.subf %38, %41 : vector<16x16xf32>
    %43 = math.exp %42 : vector<16x16xf32>
    %cst_19 = arith.constant dense<0.000000e+00> : vector<16xf32>
    %44 = vector.multi_reduction <add>, %43, %cst_19 [1] : vector<16x16xf32> to vector<16xf32>
    %45 = vector.shape_cast %44 : vector<16xf32> to vector<16x1xf32>
    %46 = vector.broadcast %45 : vector<16x1xf32> to vector<16x16xf32>
    %47 = arith.divf %43, %46 : vector<16x16xf32>
    %cst_20 = arith.constant dense<0.000000e+00> : vector<16x8xf32>
    %48 = tpu.matmul %47, %35, %cst_20 {dimension_numbers = #tpu.dot_dimension_numbers<[1], [0], [0], [1], [0, 0, 1, 1], [], []>} : vector<16x16xf32>, vector<16x8xf32>, vector<16x8xf32> -> vector<16x8xf32>
    %c0_21 = arith.constant 0 : index
    %c0_22 = arith.constant 0 : index
    %49 = vector.load %arg10[%c0_21, %c0_22] : memref<16x32xf32, #tpu.memory_space<vmem>>, vector<16x8xf32>
    tpu.vector_store %arg10[%c0_21, %c0_22], %48 {strides = array<i32>} : memref<16x32xf32, #tpu.memory_space<vmem>>, vector<16x8xf32>,
    %50 = vector.extract_strided_slice %32 {offsets = [0, 8], sizes = [16, 8], strides = [1, 1]} : vector<16x96xf32> to vector<16x8xf32>
    %51 = vector.extract_strided_slice %32 {offsets = [0, 40], sizes = [16, 8], strides = [1, 1]} : vector<16x96xf32> to vector<16x8xf32>
    %52 = vector.extract_strided_slice %32 {offsets = [0, 72], sizes = [16, 8], strides = [1, 1]} : vector<16x96xf32> to vector<16x8xf32>
    %53 = tpu.transpose %51, [1, 0] : vector<16x8xf32> -> vector<8x16xf32>
    %cst_23 = arith.constant dense<0.000000e+00> : vector<16x16xf32>
    %54 = tpu.matmul %50, %53, %cst_23 {dimension_numbers = #tpu.dot_dimension_numbers<[1], [0], [0], [1], [0, 0, 1, 1], [], []>} : vector<16x8xf32>, vector<8x16xf32>, vector<16x16xf32> -> vector<16x16xf32>
    %55 = arith.addf %54, %25 : vector<16x16xf32>
    %cst_24 = arith.constant dense<0xFF800000> : vector<16xf32>
    %56 = vector.multi_reduction <maximumf>, %55, %cst_24 [1] : vector<16x16xf32> to vector<16xf32>
    %57 = vector.shape_cast %56 : vector<16xf32> to vector<16x1xf32>
    %58 = vector.broadcast %57 : vector<16x1xf32> to vector<16x16xf32>
    %59 = arith.subf %55, %58 : vector<16x16xf32>
    %60 = math.exp %59 : vector<16x16xf32>
    %cst_25 = arith.constant dense<0.000000e+00> : vector<16xf32>
    %61 = vector.multi_reduction <add>, %60, %cst_25 [1] : vector<16x16xf32> to vector<16xf32>
    %62 = vector.shape_cast %61 : vector<16xf32> to vector<16x1xf32>
    %63 = vector.broadcast %62 : vector<16x1xf32> to vector<16x16xf32>
    %64 = arith.divf %60, %63 : vector<16x16xf32>
    %cst_26 = arith.constant dense<0.000000e+00> : vector<16x8xf32>
    %65 = tpu.matmul %64, %52, %cst_26 {dimension_numbers = #tpu.dot_dimension_numbers<[1], [0], [0], [1], [0, 0, 1, 1], [], []>} : vector<16x16xf32>, vector<16x8xf32>, vector<16x8xf32> -> vector<16x8xf32>
    %c0_27 = arith.constant 0 : index
    %c8 = arith.constant 8 : index
    %66 = vector.load %arg10[%c0_27, %c8] : memref<16x32xf32, #tpu.memory_space<vmem>>, vector<16x8xf32>
    tpu.vector_store %arg10[%c0_27, %c8], %65 {strides = array<i32>} : memref<16x32xf32, #tpu.memory_space<vmem>>, vector<16x8xf32>,
    %67 = vector.extract_strided_slice %32 {offsets = [0, 16], sizes = [16, 8], strides = [1, 1]} : vector<16x96xf32> to vector<16x8xf32>
    %68 = vector.extract_strided_slice %32 {offsets = [0, 48], sizes = [16, 8], strides = [1, 1]} : vector<16x96xf32> to vector<16x8xf32>
    %69 = vector.extract_strided_slice %32 {offsets = [0, 80], sizes = [16, 8], strides = [1, 1]} : vector<16x96xf32> to vector<16x8xf32>
    %70 = tpu.transpose %68, [1, 0] : vector<16x8xf32> -> vector<8x16xf32>
    %cst_28 = arith.constant dense<0.000000e+00> : vector<16x16xf32>
    %71 = tpu.matmul %67, %70, %cst_28 {dimension_numbers = #tpu.dot_dimension_numbers<[1], [0], [0], [1], [0, 0, 1, 1], [], []>} : vector<16x8xf32>, vector<8x16xf32>, vector<16x16xf32> -> vector<16x16xf32>
    %72 = arith.addf %71, %25 : vector<16x16xf32>
    %cst_29 = arith.constant dense<0xFF800000> : vector<16xf32>
    %73 = vector.multi_reduction <maximumf>, %72, %cst_29 [1] : vector<16x16xf32> to vector<16xf32>
    %74 = vector.shape_cast %73 : vector<16xf32> to vector<16x1xf32>
    %75 = vector.broadcast %74 : vector<16x1xf32> to vector<16x16xf32>
    %76 = arith.subf %72, %75 : vector<16x16xf32>
    %77 = math.exp %76 : vector<16x16xf32>
    %cst_30 = arith.constant dense<0.000000e+00> : vector<16xf32>
    %78 = vector.multi_reduction <add>, %77, %cst_30 [1] : vector<16x16xf32> to vector<16xf32>
    %79 = vector.shape_cast %78 : vector<16xf32> to vector<16x1xf32>
    %80 = vector.broadcast %79 : vector<16x1xf32> to vector<16x16xf32>
    %81 = arith.divf %77, %80 : vector<16x16xf32>
    %cst_31 = arith.constant dense<0.000000e+00> : vector<16x8xf32>
    %82 = tpu.matmul %81, %69, %cst_31 {dimension_numbers = #tpu.dot_dimension_numbers<[1], [0], [0], [1], [0, 0, 1, 1], [], []>} : vector<16x16xf32>, vector<16x8xf32>, vector<16x8xf32> -> vector<16x8xf32>
    %c0_32 = arith.constant 0 : index
    %c16 = arith.constant 16 : index
    %83 = vector.load %arg10[%c0_32, %c16] : memref<16x32xf32, #tpu.memory_space<vmem>>, vector<16x8xf32>
    tpu.vector_store %arg10[%c0_32, %c16], %82 {strides = array<i32>} : memref<16x32xf32, #tpu.memory_space<vmem>>, vector<16x8xf32>,
    %84 = vector.extract_strided_slice %32 {offsets = [0, 24], sizes = [16, 8], strides = [1, 1]} : vector<16x96xf32> to vector<16x8xf32>
    %85 = vector.extract_strided_slice %32 {offsets = [0, 56], sizes = [16, 8], strides = [1, 1]} : vector<16x96xf32> to vector<16x8xf32>
    %86 = vector.extract_strided_slice %32 {offsets = [0, 88], sizes = [16, 8], strides = [1, 1]} : vector<16x96xf32> to vector<16x8xf32>
    %87 = tpu.transpose %85, [1, 0] : vector<16x8xf32> -> vector<8x16xf32>
    %cst_33 = arith.constant dense<0.000000e+00> : vector<16x16xf32>
    %88 = tpu.matmul %84, %87, %cst_33 {dimension_numbers = #tpu.dot_dimension_numbers<[1], [0], [0], [1], [0, 0, 1, 1], [], []>} : vector<16x8xf32>, vector<8x16xf32>, vector<16x16xf32> -> vector<16x16xf32>
    %89 = arith.addf %88, %25 : vector<16x16xf32>
    %cst_34 = arith.constant dense<0xFF800000> : vector<16xf32>
    %90 = vector.multi_reduction <maximumf>, %89, %cst_34 [1] : vector<16x16xf32> to vector<16xf32>
    %91 = vector.shape_cast %90 : vector<16xf32> to vector<16x1xf32>
    %92 = vector.broadcast %91 : vector<16x1xf32> to vector<16x16xf32>
    %93 = arith.subf %89, %92 : vector<16x16xf32>
    %94 = math.exp %93 : vector<16x16xf32>
    %cst_35 = arith.constant dense<0.000000e+00> : vector<16xf32>
    %95 = vector.multi_reduction <add>, %94, %cst_35 [1] : vector<16x16xf32> to vector<16xf32>
    %96 = vector.shape_cast %95 : vector<16xf32> to vector<16x1xf32>
    %97 = vector.broadcast %96 : vector<16x1xf32> to vector<16x16xf32>
    %98 = arith.divf %94, %97 : vector<16x16xf32>
    %cst_36 = arith.constant dense<0.000000e+00> : vector<16x8xf32>
    %99 = tpu.matmul %98, %86, %cst_36 {dimension_numbers = #tpu.dot_dimension_numbers<[1], [0], [0], [1], [0, 0, 1, 1], [], []>} : vector<16x16xf32>, vector<16x8xf32>, vector<16x8xf32> -> vector<16x8xf32>
    %c0_37 = arith.constant 0 : index
    %c24 = arith.constant 24 : index
    %100 = vector.load %arg10[%c0_37, %c24] : memref<16x32xf32, #tpu.memory_space<vmem>>, vector<16x8xf32>
    tpu.vector_store %arg10[%c0_37, %c24], %99 {strides = array<i32>} : memref<16x32xf32, #tpu.memory_space<vmem>>, vector<16x8xf32>,
    %c0_38 = arith.constant 0 : index
    %c0_39 = arith.constant 0 : index
    %101 = vector.load %arg10[%c0_38, %c0_39] : memref<16x32xf32, #tpu.memory_space<vmem>>, vector<16x32xf32>
    %c0_40 = arith.constant 0 : index
    %c0_41 = arith.constant 0 : index
    %c0_42 = arith.constant 0 : index
    %102 = vector.load %arg5[%c0_40, %c0_41, %c0_42] : memref<2x32x32xf32, #tpu.memory_space<vmem>>, vector<1x32x32xf32>
    %103 = vector.shape_cast %102 : vector<1x32x32xf32> to vector<32x32xf32>
    %cst_43 = arith.constant dense<0.000000e+00> : vector<16x32xf32>
    %104 = tpu.matmul %101, %103, %cst_43 {dimension_numbers = #tpu.dot_dimension_numbers<[1], [0], [0], [1], [0, 0, 1, 1], [], []>} : vector<16x32xf32>, vector<32x32xf32>, vector<16x32xf32> -> vector<16x32xf32>
    %c0_44 = arith.constant 0 : index
    %c1_45 = arith.constant 1 : index
    %c0_46 = arith.constant 0 : index
    %105 = vector.load %arg8[%c0_44, %c1_45, %c0_46] : memref<2x8x96xf32, #tpu.memory_space<vmem>>, vector<1x1x32xf32>
    %106 = vector.shape_cast %105 : vector<1x1x32xf32> to vector<1x32xf32>
    %107 = vector.broadcast %106 : vector<1x32xf32> to vector<16x32xf32>
    %108 = arith.addf %104, %107 : vector<16x32xf32>
    %109 = arith.addf %108, %24 : vector<16x32xf32>
    %c0_47 = arith.constant 0 : index
    %c2 = arith.constant 2 : index
    %c0_48 = arith.constant 0 : index
    %110 = vector.load %arg8[%c0_47, %c2, %c0_48] : memref<2x8x96xf32, #tpu.memory_space<vmem>>, vector<1x1x32xf32>
    %111 = vector.shape_cast %110 : vector<1x1x32xf32> to vector<1x32xf32>
    %c0_49 = arith.constant 0 : index
    %c3 = arith.constant 3 : index
    %c0_50 = arith.constant 0 : index
    %112 = vector.load %arg8[%c0_49, %c3, %c0_50] : memref<2x8x96xf32, #tpu.memory_space<vmem>>, vector<1x1x32xf32>
    %113 = vector.shape_cast %112 : vector<1x1x32xf32> to vector<1x32xf32>
    %cst_51 = arith.constant dense<0.000000e+00> : vector<16xf32>
    %114 = vector.multi_reduction <add>, %109, %cst_51 [1] : vector<16x32xf32> to vector<16xf32>
    %115 = vector.shape_cast %114 : vector<16xf32> to vector<16x1xf32>
    %cst_52 = arith.constant 3.200000e+01 : f32
    %116 = vector.broadcast %cst_52 : f32 to vector<16x1xf32>
    %117 = arith.divf %115, %116 : vector<16x1xf32>
    %118 = vector.broadcast %117 : vector<16x1xf32> to vector<16x32xf32>
    %119 = arith.subf %109, %118 : vector<16x32xf32>
    %120 = arith.mulf %119, %119 : vector<16x32xf32>
    %cst_53 = arith.constant dense<0.000000e+00> : vector<16xf32>
    %121 = vector.multi_reduction <add>, %120, %cst_53 [1] : vector<16x32xf32> to vector<16xf32>
    %122 = vector.shape_cast %121 : vector<16xf32> to vector<16x1xf32>
    %cst_54 = arith.constant 3.200000e+01 : f32
    %123 = vector.broadcast %cst_54 : f32 to vector<16x1xf32>
    %124 = arith.divf %122, %123 : vector<16x1xf32>
    %125 = vector.broadcast %117 : vector<16x1xf32> to vector<16x32xf32>
    %126 = arith.subf %109, %125 : vector<16x32xf32>
    %cst_55 = arith.constant 9.99999974E-6 : f32
    %127 = vector.broadcast %cst_55 : f32 to vector<16x1xf32>
    %128 = arith.addf %124, %127 : vector<16x1xf32>
    %129 = math.rsqrt %128 : vector<16x1xf32>
    %130 = vector.broadcast %129 : vector<16x1xf32> to vector<16x32xf32>
    %131 = arith.mulf %126, %130 : vector<16x32xf32>
    %132 = vector.broadcast %111 : vector<1x32xf32> to vector<16x32xf32>
    %133 = arith.mulf %131, %132 : vector<16x32xf32>
    %134 = vector.broadcast %113 : vector<1x32xf32> to vector<16x32xf32>
    %135 = arith.addf %133, %134 : vector<16x32xf32>
    %c0_56 = arith.constant 0 : index
    %c0_57 = arith.constant 0 : index
    %c0_58 = arith.constant 0 : index
    %136 = vector.load %arg6[%c0_56, %c0_57, %c0_58] : memref<2x32x64xf32, #tpu.memory_space<vmem>>, vector<1x32x64xf32>
    %137 = vector.shape_cast %136 : vector<1x32x64xf32> to vector<32x64xf32>
    %cst_59 = arith.constant dense<0.000000e+00> : vector<16x64xf32>
    %138 = tpu.matmul %135, %137, %cst_59 {dimension_numbers = #tpu.dot_dimension_numbers<[1], [0], [0], [1], [0, 0, 1, 1], [], []>} : vector<16x32xf32>, vector<32x64xf32>, vector<16x64xf32> -> vector<16x64xf32>
    %c0_60 = arith.constant 0 : index
    %c4 = arith.constant 4 : index
    %c0_61 = arith.constant 0 : index
    %139 = vector.load %arg8[%c0_60, %c4, %c0_61] : memref<2x8x96xf32, #tpu.memory_space<vmem>>, vector<1x1x64xf32>
    %140 = vector.shape_cast %139 : vector<1x1x64xf32> to vector<1x64xf32>
    %141 = vector.broadcast %140 : vector<1x64xf32> to vector<16x64xf32>
    %142 = arith.addf %138, %141 : vector<16x64xf32>
    %cst_62 = arith.constant 5.000000e-01 : f32
    %143 = vector.broadcast %cst_62 : f32 to vector<16x64xf32>
    %144 = arith.mulf %143, %142 : vector<16x64xf32>
    %cst_63 = arith.constant 0.707106769 : f32
    %145 = vector.broadcast %cst_63 : f32 to vector<16x64xf32>
    %146 = arith.mulf %142, %145 : vector<16x64xf32>
    %147 = math.erf %146 : vector<16x64xf32>
    %cst_64 = arith.constant 1.000000e+00 : f32
    %148 = vector.broadcast %cst_64 : f32 to vector<16x64xf32>
    %149 = arith.addf %148, %147 : vector<16x64xf32>
    %150 = arith.mulf %144, %149 : vector<16x64xf32>
    %c0_65 = arith.constant 0 : index
    %c0_66 = arith.constant 0 : index
    %c0_67 = arith.constant 0 : index
    %151 = vector.load %arg7[%c0_65, %c0_66, %c0_67] : memref<2x64x32xf32, #tpu.memory_space<vmem>>, vector<1x64x32xf32>
    %152 = vector.shape_cast %151 : vector<1x64x32xf32> to vector<64x32xf32>
    %cst_68 = arith.constant dense<0.000000e+00> : vector<16x32xf32>
    %153 = tpu.matmul %150, %152, %cst_68 {dimension_numbers = #tpu.dot_dimension_numbers<[1], [0], [0], [1], [0, 0, 1, 1], [], []>} : vector<16x64xf32>, vector<64x32xf32>, vector<16x32xf32> -> vector<16x32xf32>
    %c0_69 = arith.constant 0 : index
    %c5 = arith.constant 5 : index
    %c0_70 = arith.constant 0 : index
    %154 = vector.load %arg8[%c0_69, %c5, %c0_70] : memref<2x8x96xf32, #tpu.memory_space<vmem>>, vector<1x1x32xf32>
    %155 = vector.shape_cast %154 : vector<1x1x32xf32> to vector<1x32xf32>
    %156 = vector.broadcast %155 : vector<1x32xf32> to vector<16x32xf32>
    %157 = arith.addf %153, %156 : vector<16x32xf32>
    %158 = arith.addf %157, %135 : vector<16x32xf32>
    %c0_71 = arith.constant 0 : index
    %c6 = arith.constant 6 : index
    %c0_72 = arith.constant 0 : index
    %159 = vector.load %arg8[%c0_71, %c6, %c0_72] : memref<2x8x96xf32, #tpu.memory_space<vmem>>, vector<1x1x32xf32>
    %160 = vector.shape_cast %159 : vector<1x1x32xf32> to vector<1x32xf32>
    %c0_73 = arith.constant 0 : index
    %c7 = arith.constant 7 : index
    %c0_74 = arith.constant 0 : index
    %161 = vector.load %arg8[%c0_73, %c7, %c0_74] : memref<2x8x96xf32, #tpu.memory_space<vmem>>, vector<1x1x32xf32>
    %162 = vector.shape_cast %161 : vector<1x1x32xf32> to vector<1x32xf32>
    %cst_75 = arith.constant dense<0.000000e+00> : vector<16xf32>
    %163 = vector.multi_reduction <add>, %158, %cst_75 [1] : vector<16x32xf32> to vector<16xf32>
    %164 = vector.shape_cast %163 : vector<16xf32> to vector<16x1xf32>
    %cst_76 = arith.constant 3.200000e+01 : f32
    %165 = vector.broadcast %cst_76 : f32 to vector<16x1xf32>
    %166 = arith.divf %164, %165 : vector<16x1xf32>
    %167 = vector.broadcast %166 : vector<16x1xf32> to vector<16x32xf32>
    %168 = arith.subf %158, %167 : vector<16x32xf32>
    %169 = arith.mulf %168, %168 : vector<16x32xf32>
    %cst_77 = arith.constant dense<0.000000e+00> : vector<16xf32>
    %170 = vector.multi_reduction <add>, %169, %cst_77 [1] : vector<16x32xf32> to vector<16xf32>
    %171 = vector.shape_cast %170 : vector<16xf32> to vector<16x1xf32>
    %cst_78 = arith.constant 3.200000e+01 : f32
    %172 = vector.broadcast %cst_78 : f32 to vector<16x1xf32>
    %173 = arith.divf %171, %172 : vector<16x1xf32>
    %174 = vector.broadcast %166 : vector<16x1xf32> to vector<16x32xf32>
    %175 = arith.subf %158, %174 : vector<16x32xf32>
    %cst_79 = arith.constant 9.99999974E-6 : f32
    %176 = vector.broadcast %cst_79 : f32 to vector<16x1xf32>
    %177 = arith.addf %173, %176 : vector<16x1xf32>
    %178 = math.rsqrt %177 : vector<16x1xf32>
    %179 = vector.broadcast %178 : vector<16x1xf32> to vector<16x32xf32>
    %180 = arith.mulf %175, %179 : vector<16x32xf32>
    %181 = vector.broadcast %160 : vector<1x32xf32> to vector<16x32xf32>
    %182 = arith.mulf %180, %181 : vector<16x32xf32>
    %183 = vector.broadcast %162 : vector<1x32xf32> to vector<16x32xf32>
    %184 = arith.addf %182, %183 : vector<16x32xf32>
    %c1_80 = arith.constant 1 : index
    %c0_81 = arith.constant 0 : index
    %c0_82 = arith.constant 0 : index
    %185 = vector.load %arg4[%c1_80, %c0_81, %c0_82] : memref<2x32x96xf32, #tpu.memory_space<vmem>>, vector<1x32x96xf32>
    %186 = vector.shape_cast %185 : vector<1x32x96xf32> to vector<32x96xf32>
    %cst_83 = arith.constant dense<0.000000e+00> : vector<16x96xf32>
    %187 = tpu.matmul %184, %186, %cst_83 {dimension_numbers = #tpu.dot_dimension_numbers<[1], [0], [0], [1], [0, 0, 1, 1], [], []>} : vector<16x32xf32>, vector<32x96xf32>, vector<16x96xf32> -> vector<16x96xf32>
    %c1_84 = arith.constant 1 : index
    %c0_85 = arith.constant 0 : index
    %c0_86 = arith.constant 0 : index
    %188 = vector.load %arg8[%c1_84, %c0_85, %c0_86] : memref<2x8x96xf32, #tpu.memory_space<vmem>>, vector<1x1x96xf32>
    %189 = vector.shape_cast %188 : vector<1x1x96xf32> to vector<1x96xf32>
    %190 = vector.broadcast %189 : vector<1x96xf32> to vector<16x96xf32>
    %191 = arith.addf %187, %190 : vector<16x96xf32>
    %192 = vector.extract_strided_slice %191 {offsets = [0, 0], sizes = [16, 8], strides = [1, 1]} : vector<16x96xf32> to vector<16x8xf32>
    %193 = vector.extract_strided_slice %191 {offsets = [0, 32], sizes = [16, 8], strides = [1, 1]} : vector<16x96xf32> to vector<16x8xf32>
    %194 = vector.extract_strided_slice %191 {offsets = [0, 64], sizes = [16, 8], strides = [1, 1]} : vector<16x96xf32> to vector<16x8xf32>
    %195 = tpu.transpose %193, [1, 0] : vector<16x8xf32> -> vector<8x16xf32>
    %cst_87 = arith.constant dense<0.000000e+00> : vector<16x16xf32>
    %196 = tpu.matmul %192, %195, %cst_87 {dimension_numbers = #tpu.dot_dimension_numbers<[1], [0], [0], [1], [0, 0, 1, 1], [], []>} : vector<16x8xf32>, vector<8x16xf32>, vector<16x16xf32> -> vector<16x16xf32>
    %197 = arith.addf %196, %25 : vector<16x16xf32>
    %cst_88 = arith.constant dense<0xFF800000> : vector<16xf32>
    %198 = vector.multi_reduction <maximumf>, %197, %cst_88 [1] : vector<16x16xf32> to vector<16xf32>
    %199 = vector.shape_cast %198 : vector<16xf32> to vector<16x1xf32>
    %200 = vector.broadcast %199 : vector<16x1xf32> to vector<16x16xf32>
    %201 = arith.subf %197, %200 : vector<16x16xf32>
    %202 = math.exp %201 : vector<16x16xf32>
    %cst_89 = arith.constant dense<0.000000e+00> : vector<16xf32>
    %203 = vector.multi_reduction <add>, %202, %cst_89 [1] : vector<16x16xf32> to vector<16xf32>
    %204 = vector.shape_cast %203 : vector<16xf32> to vector<16x1xf32>
    %205 = vector.broadcast %204 : vector<16x1xf32> to vector<16x16xf32>
    %206 = arith.divf %202, %205 : vector<16x16xf32>
    %cst_90 = arith.constant dense<0.000000e+00> : vector<16x8xf32>
    %207 = tpu.matmul %206, %194, %cst_90 {dimension_numbers = #tpu.dot_dimension_numbers<[1], [0], [0], [1], [0, 0, 1, 1], [], []>} : vector<16x16xf32>, vector<16x8xf32>, vector<16x8xf32> -> vector<16x8xf32>
    %c0_91 = arith.constant 0 : index
    %c0_92 = arith.constant 0 : index
    %208 = vector.load %arg10[%c0_91, %c0_92] : memref<16x32xf32, #tpu.memory_space<vmem>>, vector<16x8xf32>
    tpu.vector_store %arg10[%c0_91, %c0_92], %207 {strides = array<i32>} : memref<16x32xf32, #tpu.memory_space<vmem>>, vector<16x8xf32>,
    %209 = vector.extract_strided_slice %191 {offsets = [0, 8], sizes = [16, 8], strides = [1, 1]} : vector<16x96xf32> to vector<16x8xf32>
    %210 = vector.extract_strided_slice %191 {offsets = [0, 40], sizes = [16, 8], strides = [1, 1]} : vector<16x96xf32> to vector<16x8xf32>
    %211 = vector.extract_strided_slice %191 {offsets = [0, 72], sizes = [16, 8], strides = [1, 1]} : vector<16x96xf32> to vector<16x8xf32>
    %212 = tpu.transpose %210, [1, 0] : vector<16x8xf32> -> vector<8x16xf32>
    %cst_93 = arith.constant dense<0.000000e+00> : vector<16x16xf32>
    %213 = tpu.matmul %209, %212, %cst_93 {dimension_numbers = #tpu.dot_dimension_numbers<[1], [0], [0], [1], [0, 0, 1, 1], [], []>} : vector<16x8xf32>, vector<8x16xf32>, vector<16x16xf32> -> vector<16x16xf32>
    %214 = arith.addf %213, %25 : vector<16x16xf32>
    %cst_94 = arith.constant dense<0xFF800000> : vector<16xf32>
    %215 = vector.multi_reduction <maximumf>, %214, %cst_94 [1] : vector<16x16xf32> to vector<16xf32>
    %216 = vector.shape_cast %215 : vector<16xf32> to vector<16x1xf32>
    %217 = vector.broadcast %216 : vector<16x1xf32> to vector<16x16xf32>
    %218 = arith.subf %214, %217 : vector<16x16xf32>
    %219 = math.exp %218 : vector<16x16xf32>
    %cst_95 = arith.constant dense<0.000000e+00> : vector<16xf32>
    %220 = vector.multi_reduction <add>, %219, %cst_95 [1] : vector<16x16xf32> to vector<16xf32>
    %221 = vector.shape_cast %220 : vector<16xf32> to vector<16x1xf32>
    %222 = vector.broadcast %221 : vector<16x1xf32> to vector<16x16xf32>
    %223 = arith.divf %219, %222 : vector<16x16xf32>
    %cst_96 = arith.constant dense<0.000000e+00> : vector<16x8xf32>
    %224 = tpu.matmul %223, %211, %cst_96 {dimension_numbers = #tpu.dot_dimension_numbers<[1], [0], [0], [1], [0, 0, 1, 1], [], []>} : vector<16x16xf32>, vector<16x8xf32>, vector<16x8xf32> -> vector<16x8xf32>
    %c0_97 = arith.constant 0 : index
    %c8_98 = arith.constant 8 : index
    %225 = vector.load %arg10[%c0_97, %c8_98] : memref<16x32xf32, #tpu.memory_space<vmem>>, vector<16x8xf32>
    tpu.vector_store %arg10[%c0_97, %c8_98], %224 {strides = array<i32>} : memref<16x32xf32, #tpu.memory_space<vmem>>, vector<16x8xf32>,
    %226 = vector.extract_strided_slice %191 {offsets = [0, 16], sizes = [16, 8], strides = [1, 1]} : vector<16x96xf32> to vector<16x8xf32>
    %227 = vector.extract_strided_slice %191 {offsets = [0, 48], sizes = [16, 8], strides = [1, 1]} : vector<16x96xf32> to vector<16x8xf32>
    %228 = vector.extract_strided_slice %191 {offsets = [0, 80], sizes = [16, 8], strides = [1, 1]} : vector<16x96xf32> to vector<16x8xf32>
    %229 = tpu.transpose %227, [1, 0] : vector<16x8xf32> -> vector<8x16xf32>
    %cst_99 = arith.constant dense<0.000000e+00> : vector<16x16xf32>
    %230 = tpu.matmul %226, %229, %cst_99 {dimension_numbers = #tpu.dot_dimension_numbers<[1], [0], [0], [1], [0, 0, 1, 1], [], []>} : vector<16x8xf32>, vector<8x16xf32>, vector<16x16xf32> -> vector<16x16xf32>
    %231 = arith.addf %230, %25 : vector<16x16xf32>
    %cst_100 = arith.constant dense<0xFF800000> : vector<16xf32>
    %232 = vector.multi_reduction <maximumf>, %231, %cst_100 [1] : vector<16x16xf32> to vector<16xf32>
    %233 = vector.shape_cast %232 : vector<16xf32> to vector<16x1xf32>
    %234 = vector.broadcast %233 : vector<16x1xf32> to vector<16x16xf32>
    %235 = arith.subf %231, %234 : vector<16x16xf32>
    %236 = math.exp %235 : vector<16x16xf32>
    %cst_101 = arith.constant dense<0.000000e+00> : vector<16xf32>
    %237 = vector.multi_reduction <add>, %236, %cst_101 [1] : vector<16x16xf32> to vector<16xf32>
    %238 = vector.shape_cast %237 : vector<16xf32> to vector<16x1xf32>
    %239 = vector.broadcast %238 : vector<16x1xf32> to vector<16x16xf32>
    %240 = arith.divf %236, %239 : vector<16x16xf32>
    %cst_102 = arith.constant dense<0.000000e+00> : vector<16x8xf32>
    %241 = tpu.matmul %240, %228, %cst_102 {dimension_numbers = #tpu.dot_dimension_numbers<[1], [0], [0], [1], [0, 0, 1, 1], [], []>} : vector<16x16xf32>, vector<16x8xf32>, vector<16x8xf32> -> vector<16x8xf32>
    %c0_103 = arith.constant 0 : index
    %c16_104 = arith.constant 16 : index
    %242 = vector.load %arg10[%c0_103, %c16_104] : memref<16x32xf32, #tpu.memory_space<vmem>>, vector<16x8xf32>
    tpu.vector_store %arg10[%c0_103, %c16_104], %241 {strides = array<i32>} : memref<16x32xf32, #tpu.memory_space<vmem>>, vector<16x8xf32>,
    %243 = vector.extract_strided_slice %191 {offsets = [0, 24], sizes = [16, 8], strides = [1, 1]} : vector<16x96xf32> to vector<16x8xf32>
    %244 = vector.extract_strided_slice %191 {offsets = [0, 56], sizes = [16, 8], strides = [1, 1]} : vector<16x96xf32> to vector<16x8xf32>
    %245 = vector.extract_strided_slice %191 {offsets = [0, 88], sizes = [16, 8], strides = [1, 1]} : vector<16x96xf32> to vector<16x8xf32>
    %246 = tpu.transpose %244, [1, 0] : vector<16x8xf32> -> vector<8x16xf32>
    %cst_105 = arith.constant dense<0.000000e+00> : vector<16x16xf32>
    %247 = tpu.matmul %243, %246, %cst_105 {dimension_numbers = #tpu.dot_dimension_numbers<[1], [0], [0], [1], [0, 0, 1, 1], [], []>} : vector<16x8xf32>, vector<8x16xf32>, vector<16x16xf32> -> vector<16x16xf32>
    %248 = arith.addf %247, %25 : vector<16x16xf32>
    %cst_106 = arith.constant dense<0xFF800000> : vector<16xf32>
    %249 = vector.multi_reduction <maximumf>, %248, %cst_106 [1] : vector<16x16xf32> to vector<16xf32>
    %250 = vector.shape_cast %249 : vector<16xf32> to vector<16x1xf32>
    %251 = vector.broadcast %250 : vector<16x1xf32> to vector<16x16xf32>
    %252 = arith.subf %248, %251 : vector<16x16xf32>
    %253 = math.exp %252 : vector<16x16xf32>
    %cst_107 = arith.constant dense<0.000000e+00> : vector<16xf32>
    %254 = vector.multi_reduction <add>, %253, %cst_107 [1] : vector<16x16xf32> to vector<16xf32>
    %255 = vector.shape_cast %254 : vector<16xf32> to vector<16x1xf32>
    %256 = vector.broadcast %255 : vector<16x1xf32> to vector<16x16xf32>
    %257 = arith.divf %253, %256 : vector<16x16xf32>
    %cst_108 = arith.constant dense<0.000000e+00> : vector<16x8xf32>
    %258 = tpu.matmul %257, %245, %cst_108 {dimension_numbers = #tpu.dot_dimension_numbers<[1], [0], [0], [1], [0, 0, 1, 1], [], []>} : vector<16x16xf32>, vector<16x8xf32>, vector<16x8xf32> -> vector<16x8xf32>
    %c0_109 = arith.constant 0 : index
    %c24_110 = arith.constant 24 : index
    %259 = vector.load %arg10[%c0_109, %c24_110] : memref<16x32xf32, #tpu.memory_space<vmem>>, vector<16x8xf32>
    tpu.vector_store %arg10[%c0_109, %c24_110], %258 {strides = array<i32>} : memref<16x32xf32, #tpu.memory_space<vmem>>, vector<16x8xf32>,
    %c0_111 = arith.constant 0 : index
    %c0_112 = arith.constant 0 : index
    %260 = vector.load %arg10[%c0_111, %c0_112] : memref<16x32xf32, #tpu.memory_space<vmem>>, vector<16x32xf32>
    %c1_113 = arith.constant 1 : index
    %c0_114 = arith.constant 0 : index
    %c0_115 = arith.constant 0 : index
    %261 = vector.load %arg5[%c1_113, %c0_114, %c0_115] : memref<2x32x32xf32, #tpu.memory_space<vmem>>, vector<1x32x32xf32>
    %262 = vector.shape_cast %261 : vector<1x32x32xf32> to vector<32x32xf32>
    %cst_116 = arith.constant dense<0.000000e+00> : vector<16x32xf32>
    %263 = tpu.matmul %260, %262, %cst_116 {dimension_numbers = #tpu.dot_dimension_numbers<[1], [0], [0], [1], [0, 0, 1, 1], [], []>} : vector<16x32xf32>, vector<32x32xf32>, vector<16x32xf32> -> vector<16x32xf32>
    %c1_117 = arith.constant 1 : index
    %c1_118 = arith.constant 1 : index
    %c0_119 = arith.constant 0 : index
    %264 = vector.load %arg8[%c1_117, %c1_118, %c0_119] : memref<2x8x96xf32, #tpu.memory_space<vmem>>, vector<1x1x32xf32>
    %265 = vector.shape_cast %264 : vector<1x1x32xf32> to vector<1x32xf32>
    %266 = vector.broadcast %265 : vector<1x32xf32> to vector<16x32xf32>
    %267 = arith.addf %263, %266 : vector<16x32xf32>
    %268 = arith.addf %267, %184 : vector<16x32xf32>
    %c1_120 = arith.constant 1 : index
    %c2_121 = arith.constant 2 : index
    %c0_122 = arith.constant 0 : index
    %269 = vector.load %arg8[%c1_120, %c2_121, %c0_122] : memref<2x8x96xf32, #tpu.memory_space<vmem>>, vector<1x1x32xf32>
    %270 = vector.shape_cast %269 : vector<1x1x32xf32> to vector<1x32xf32>
    %c1_123 = arith.constant 1 : index
    %c3_124 = arith.constant 3 : index
    %c0_125 = arith.constant 0 : index
    %271 = vector.load %arg8[%c1_123, %c3_124, %c0_125] : memref<2x8x96xf32, #tpu.memory_space<vmem>>, vector<1x1x32xf32>
    %272 = vector.shape_cast %271 : vector<1x1x32xf32> to vector<1x32xf32>
    %cst_126 = arith.constant dense<0.000000e+00> : vector<16xf32>
    %273 = vector.multi_reduction <add>, %268, %cst_126 [1] : vector<16x32xf32> to vector<16xf32>
    %274 = vector.shape_cast %273 : vector<16xf32> to vector<16x1xf32>
    %cst_127 = arith.constant 3.200000e+01 : f32
    %275 = vector.broadcast %cst_127 : f32 to vector<16x1xf32>
    %276 = arith.divf %274, %275 : vector<16x1xf32>
    %277 = vector.broadcast %276 : vector<16x1xf32> to vector<16x32xf32>
    %278 = arith.subf %268, %277 : vector<16x32xf32>
    %279 = arith.mulf %278, %278 : vector<16x32xf32>
    %cst_128 = arith.constant dense<0.000000e+00> : vector<16xf32>
    %280 = vector.multi_reduction <add>, %279, %cst_128 [1] : vector<16x32xf32> to vector<16xf32>
    %281 = vector.shape_cast %280 : vector<16xf32> to vector<16x1xf32>
    %cst_129 = arith.constant 3.200000e+01 : f32
    %282 = vector.broadcast %cst_129 : f32 to vector<16x1xf32>
    %283 = arith.divf %281, %282 : vector<16x1xf32>
    %284 = vector.broadcast %276 : vector<16x1xf32> to vector<16x32xf32>
    %285 = arith.subf %268, %284 : vector<16x32xf32>
    %cst_130 = arith.constant 9.99999974E-6 : f32
    %286 = vector.broadcast %cst_130 : f32 to vector<16x1xf32>
    %287 = arith.addf %283, %286 : vector<16x1xf32>
    %288 = math.rsqrt %287 : vector<16x1xf32>
    %289 = vector.broadcast %288 : vector<16x1xf32> to vector<16x32xf32>
    %290 = arith.mulf %285, %289 : vector<16x32xf32>
    %291 = vector.broadcast %270 : vector<1x32xf32> to vector<16x32xf32>
    %292 = arith.mulf %290, %291 : vector<16x32xf32>
    %293 = vector.broadcast %272 : vector<1x32xf32> to vector<16x32xf32>
    %294 = arith.addf %292, %293 : vector<16x32xf32>
    %c1_131 = arith.constant 1 : index
    %c0_132 = arith.constant 0 : index
    %c0_133 = arith.constant 0 : index
    %295 = vector.load %arg6[%c1_131, %c0_132, %c0_133] : memref<2x32x64xf32, #tpu.memory_space<vmem>>, vector<1x32x64xf32>
    %296 = vector.shape_cast %295 : vector<1x32x64xf32> to vector<32x64xf32>
    %cst_134 = arith.constant dense<0.000000e+00> : vector<16x64xf32>
    %297 = tpu.matmul %294, %296, %cst_134 {dimension_numbers = #tpu.dot_dimension_numbers<[1], [0], [0], [1], [0, 0, 1, 1], [], []>} : vector<16x32xf32>, vector<32x64xf32>, vector<16x64xf32> -> vector<16x64xf32>
    %c1_135 = arith.constant 1 : index
    %c4_136 = arith.constant 4 : index
    %c0_137 = arith.constant 0 : index
    %298 = vector.load %arg8[%c1_135, %c4_136, %c0_137] : memref<2x8x96xf32, #tpu.memory_space<vmem>>, vector<1x1x64xf32>
    %299 = vector.shape_cast %298 : vector<1x1x64xf32> to vector<1x64xf32>
    %300 = vector.broadcast %299 : vector<1x64xf32> to vector<16x64xf32>
    %301 = arith.addf %297, %300 : vector<16x64xf32>
    %cst_138 = arith.constant 5.000000e-01 : f32
    %302 = vector.broadcast %cst_138 : f32 to vector<16x64xf32>
    %303 = arith.mulf %302, %301 : vector<16x64xf32>
    %cst_139 = arith.constant 0.707106769 : f32
    %304 = vector.broadcast %cst_139 : f32 to vector<16x64xf32>
    %305 = arith.mulf %301, %304 : vector<16x64xf32>
    %306 = math.erf %305 : vector<16x64xf32>
    %cst_140 = arith.constant 1.000000e+00 : f32
    %307 = vector.broadcast %cst_140 : f32 to vector<16x64xf32>
    %308 = arith.addf %307, %306 : vector<16x64xf32>
    %309 = arith.mulf %303, %308 : vector<16x64xf32>
    %c1_141 = arith.constant 1 : index
    %c0_142 = arith.constant 0 : index
    %c0_143 = arith.constant 0 : index
    %310 = vector.load %arg7[%c1_141, %c0_142, %c0_143] : memref<2x64x32xf32, #tpu.memory_space<vmem>>, vector<1x64x32xf32>
    %311 = vector.shape_cast %310 : vector<1x64x32xf32> to vector<64x32xf32>
    %cst_144 = arith.constant dense<0.000000e+00> : vector<16x32xf32>
    %312 = tpu.matmul %309, %311, %cst_144 {dimension_numbers = #tpu.dot_dimension_numbers<[1], [0], [0], [1], [0, 0, 1, 1], [], []>} : vector<16x64xf32>, vector<64x32xf32>, vector<16x32xf32> -> vector<16x32xf32>
    %c1_145 = arith.constant 1 : index
    %c5_146 = arith.constant 5 : index
    %c0_147 = arith.constant 0 : index
    %313 = vector.load %arg8[%c1_145, %c5_146, %c0_147] : memref<2x8x96xf32, #tpu.memory_space<vmem>>, vector<1x1x32xf32>
    %314 = vector.shape_cast %313 : vector<1x1x32xf32> to vector<1x32xf32>
    %315 = vector.broadcast %314 : vector<1x32xf32> to vector<16x32xf32>
    %316 = arith.addf %312, %315 : vector<16x32xf32>
    %317 = arith.addf %316, %294 : vector<16x32xf32>
    %c1_148 = arith.constant 1 : index
    %c6_149 = arith.constant 6 : index
    %c0_150 = arith.constant 0 : index
    %318 = vector.load %arg8[%c1_148, %c6_149, %c0_150] : memref<2x8x96xf32, #tpu.memory_space<vmem>>, vector<1x1x32xf32>
    %319 = vector.shape_cast %318 : vector<1x1x32xf32> to vector<1x32xf32>
    %c1_151 = arith.constant 1 : index
    %c7_152 = arith.constant 7 : index
    %c0_153 = arith.constant 0 : index
    %320 = vector.load %arg8[%c1_151, %c7_152, %c0_153] : memref<2x8x96xf32, #tpu.memory_space<vmem>>, vector<1x1x32xf32>
    %321 = vector.shape_cast %320 : vector<1x1x32xf32> to vector<1x32xf32>
    %cst_154 = arith.constant dense<0.000000e+00> : vector<16xf32>
    %322 = vector.multi_reduction <add>, %317, %cst_154 [1] : vector<16x32xf32> to vector<16xf32>
    %323 = vector.shape_cast %322 : vector<16xf32> to vector<16x1xf32>
    %cst_155 = arith.constant 3.200000e+01 : f32
    %324 = vector.broadcast %cst_155 : f32 to vector<16x1xf32>
    %325 = arith.divf %323, %324 : vector<16x1xf32>
    %326 = vector.broadcast %325 : vector<16x1xf32> to vector<16x32xf32>
    %327 = arith.subf %317, %326 : vector<16x32xf32>
    %328 = arith.mulf %327, %327 : vector<16x32xf32>
    %cst_156 = arith.constant dense<0.000000e+00> : vector<16xf32>
    %329 = vector.multi_reduction <add>, %328, %cst_156 [1] : vector<16x32xf32> to vector<16xf32>
    %330 = vector.shape_cast %329 : vector<16xf32> to vector<16x1xf32>
    %cst_157 = arith.constant 3.200000e+01 : f32
    %331 = vector.broadcast %cst_157 : f32 to vector<16x1xf32>
    %332 = arith.divf %330, %331 : vector<16x1xf32>
    %333 = vector.broadcast %325 : vector<16x1xf32> to vector<16x32xf32>
    %334 = arith.subf %317, %333 : vector<16x32xf32>
    %cst_158 = arith.constant 9.99999974E-6 : f32
    %335 = vector.broadcast %cst_158 : f32 to vector<16x1xf32>
    %336 = arith.addf %332, %335 : vector<16x1xf32>
    %337 = math.rsqrt %336 : vector<16x1xf32>
    %338 = vector.broadcast %337 : vector<16x1xf32> to vector<16x32xf32>
    %339 = arith.mulf %334, %338 : vector<16x32xf32>
    %340 = vector.broadcast %319 : vector<1x32xf32> to vector<16x32xf32>
    %341 = arith.mulf %339, %340 : vector<16x32xf32>
    %342 = vector.broadcast %321 : vector<1x32xf32> to vector<16x32xf32>
    %343 = arith.addf %341, %342 : vector<16x32xf32>
    %c0_159 = arith.constant 0 : index
    %c0_160 = arith.constant 0 : index
    %344 = vector.load %arg9[%c0_159, %c0_160] : memref<16x32xf32, #tpu.memory_space<vmem>>, vector<16x32xf32>
    tpu.vector_store %arg9[%c0_159, %c0_160], %343 {strides = array<i32>} : memref<16x32xf32, #tpu.memory_space<vmem>>, vector<16x32xf32>,
    return
  }
  func.func @transform_0(%arg0: i32) -> (i32, i32) {
    %c0_i32 = arith.constant 0 : i32
    %c0_i32_0 = arith.constant 0 : i32
    %c0_i32_1 = arith.constant 0 : i32
    return %c0_i32, %c0_i32_0 : i32, i32
  }
  func.func @transform_1(%arg0: i32) -> (i32, i32) {
    %c0_i32 = arith.constant 0 : i32
    %c0_i32_0 = arith.constant 0 : i32
    %c0_i32_1 = arith.constant 0 : i32
    return %c0_i32, %c0_i32_0 : i32, i32
  }
  func.func @transform_2(%arg0: i32) -> (i32, i32) {
    %c0_i32 = arith.constant 0 : i32
    %c0_i32_0 = arith.constant 0 : i32
    %c0_i32_1 = arith.constant 0 : i32
    return %c0_i32, %c0_i32_0 : i32, i32
  }
  func.func @transform_3(%arg0: i32) -> (i32, i32, i32) {
    %c0_i32 = arith.constant 0 : i32
    %c0_i32_0 = arith.constant 0 : i32
    %c0_i32_1 = arith.constant 0 : i32
    %c0_i32_2 = arith.constant 0 : i32
    return %c0_i32, %c0_i32_0, %c0_i32_1 : i32, i32, i32
  }
  func.func @transform_4(%arg0: i32) -> (i32, i32, i32) {
    %c0_i32 = arith.constant 0 : i32
    %c0_i32_0 = arith.constant 0 : i32
    %c0_i32_1 = arith.constant 0 : i32
    %c0_i32_2 = arith.constant 0 : i32
    return %c0_i32, %c0_i32_0, %c0_i32_1 : i32, i32, i32
  }
  func.func @transform_5(%arg0: i32) -> (i32, i32, i32) {
    %c0_i32 = arith.constant 0 : i32
    %c0_i32_0 = arith.constant 0 : i32
    %c0_i32_1 = arith.constant 0 : i32
    %c0_i32_2 = arith.constant 0 : i32
    return %c0_i32, %c0_i32_0, %c0_i32_1 : i32, i32, i32
  }
  func.func @transform_6(%arg0: i32) -> (i32, i32, i32) {
    %c0_i32 = arith.constant 0 : i32
    %c0_i32_0 = arith.constant 0 : i32
    %c0_i32_1 = arith.constant 0 : i32
    %c0_i32_2 = arith.constant 0 : i32
    return %c0_i32, %c0_i32_0, %c0_i32_1 : i32, i32, i32
  }
  func.func @transform_7(%arg0: i32) -> (i32, i32, i32) {
    %c0_i32 = arith.constant 0 : i32
    %c0_i32_0 = arith.constant 0 : i32
    %c0_i32_1 = arith.constant 0 : i32
    %c0_i32_2 = arith.constant 0 : i32
    return %c0_i32, %c0_i32_0, %c0_i32_1 : i32, i32, i32
  }
  func.func @transform_8(%arg0: i32) -> (i32, i32) {
    %c0_i32 = arith.constant 0 : i32
    %c0_i32_0 = arith.constant 0 : i32
    %c0_i32_1 = arith.constant 0 : i32
    return %c0_i32, %c0_i32_0 : i32, i32
  }
}

</mosaic_0001>

<bundles_post_ra>
// kernel: roberta_forward.1
= control target key start
LH: loop header
LB: loop body
LE: loop exit
PB: predicated region body
PF: predicated region fallthrough
CT: control target
= control target key end

     0   :  { %vm34_vm0 = vcmask 261120   ;;  %s4059_s0 = inlined_call_operand.vmem [shape: f32[16,32], index: 0, kind: input, shape index: {}]   ;;  %s4060_s1 = inlined_call_operand.vmem [shape: f32[2,32], index: 1, kind: input, shape index: {}]   ;;  %s4061_s2 = inlined_call_operand.vmem [shape: f32[16,16], index: 2, kind: input, shape index: {}]   ;;  %s4062_s3 = inlined_call_operand.vmem [shape: f32[2,32,96], index: 3, kind: input, shape index: {}]   ;;  %s4063_s4 = inlined_call_operand.vmem [shape: f32[2,32,32], index: 4, kind: input, shape index: {}]   ;;  %s4064_s5 = inlined_call_operand.vmem [shape: f32[2,32,64], index: 5, kind: input, shape index: {}]   ;;  %s4065_s6 = inlined_call_operand.vmem [shape: f32[2,64,32], index: 6, kind: input, shape index: {}]   ;;  %s4066_s7 = inlined_call_operand.vmem [shape: f32[2,8,96], index: 7, kind: input, shape index: {}]   ;;  %s4067_s8 = inlined_call_operand.hbm [shape: f32[16,32], index: 8, kind: output, shape index: {}]  }
   0x1   :  { %v30_v0 = vld [vmem:[%s4059_s0] sm:$0xff]  ;;  %v31_v1 = vld [vmem:[%s4059_s0 + $0x8] sm:$0xff] }
   0x2   :  { %13 = vsyncpa [#allocation4], 0  ;;  %v35_v2 = vsel %vm34_vm0, %v30_v0, 0.0  ;;  %v38_v3 = vsel %vm34_vm0, %v31_v1, 0.0  ;;  %v76_v14 = vld [vmem:[%s4062_s3] sm:$0xff]  ;;  %v77_v15 = vld [vmem:[%s4062_s3 + $0x8] sm:$0xff] }
   0x3   :  { %36 = vadd.xlane.f32.xlu0 %v35_v2  ;;  %v78_v16 = vld [vmem:[%s4062_s3 + $0x10] sm:$0xff]  ;;  %v3131_v17 = vpack.c.bf16 %v77_v15, %v76_v14  ;;  %v79_v18 = vld [vmem:[%s4062_s3 + $0x18] sm:$0xff]  ;;  %v2685_v27 = vld [vmem:[%s4060_s1] ss:$0 sm:$0xff]  ;;  %vm172_vm1 = vcmask 64512   ;;  %s3506_s22 = smov 96  }
   0x4   :  { %v3135_v19 = vpack.c.bf16 %v79_v18, %v78_v16  ;;  %v2686_v29 = vld [vmem:[%s4060_s1 + $0x1] ss:$0 sm:$0xff]  ;;  %v2687_v36 = vld [vmem:[%s4066_s7] ss:$0 sm:$0xff]  ;;  %s3505_s1 = smov 88   ;;  %s3507_s23 = smov 120   ;;  %vm3625_vm2 = vmpackc.low %vm172_vm1, %vm172_vm1 }
   0x5   :  { %3132 = vmatprep.subr.bf16.mxu1 %v3131_v17  ;;  %v3644_v53 = vld [vmem:[%s4061_s2 + $0x8] sm:$0xff]  ;;  %v3649_v54 = vld [vmem:[%s4061_s2] sm:$0xff]  ;;  %vm256_vm3 = vcmask 130048   ;;  %s3508_s28 = smov 56   ;;  %s3509_s29 = smov 64   ;;  %vm576_vm4 = vcmask 130112  }
   0x6   :  { %3134 = vmatpush3.bf16.msra.mxu1 %v3131_v17  ;;  %s3510_s30 = smov 80   ;;  %s3511_s0 = smov 112   ;;  %vm787_vm5 = vcmask 195712   ;;  %vm998_vm6 = vcmask 261312   ;;  %vm1248_vm7 = vcmask 523264  }
   0x7   :  { %39 = vadd.xlane.f32.xlu0 %v38_v3  ;;  %3136 = vmatprep.subr.bf16.mxu1 %v3135_v19  ;;  %s3512_s9 = smov 48   ;;  %s3513_s10 = smov 104  }
   0x8   :  { %s3514_s11 = smov 72   ;;  %s3515_s12 = smov 40  }
   0x9   :  { %s3516_s13 = smov 8   ;;  %s3517_s14 = smov 16  }
   0xa   :  { %3138 = vmatpush3.bf16.msra.mxu1 %v3135_v19  ;;  %s3518_s25 = smov 24  }
  0x90   :  { %v37_v4 = vpop.xlane.xlu0 %36 }
  0x91   :  { %v42_v5 = vmul.f32 0.03125, %v37_v4 }
  0x93   :  { %v44_v6 = vsub.f32 %v30_v0, %v42_v5 }
  0x94   :  { %v40_v7 = vpop.xlane.xlu0 %39 }
  0x95   :  { %v43_v8 = vmul.f32 0.03125, %v40_v7  ;;  %v46_v9 = vmul.f32 %v44_v6, %v44_v6 }
  0x97   :  { %v45_v10 = vsub.f32 %v31_v1, %v43_v8  ;;  %v48_v11 = vsel %vm34_vm0, %v46_v9, 0.0 }
  0x98   :  { %49 = vadd.xlane.f32.xlu1 %v48_v11 }
  0x99   :  { %v47_v12 = vmul.f32 %v45_v10, %v45_v10 }
  0x9b   :  { %v51_v13 = vsel %vm34_vm0, %v47_v12, 0.0 }
  0x9c   :  { %52 = vadd.xlane.f32.xlu1 %v51_v13 }
 0x125   :  { %v50_v20 = vpop.xlane.xlu1 %49 }
 0x126   :  { %v54_v21 = vmul.f32 0.03125, %v50_v20 }
 0x128   :  { %v56_v22 = vadd.f32 1e-05, %v54_v21 }
 0x129   :  { %v53_v23 = vpop.xlane.xlu1 %52 }
 0x12a   :  { %3387 = vrsqrt.f32 %v56_v22  ;;  %v55_v24 = vmul.f32 0.03125, %v53_v23 }
 0x12c   :  { %v57_v25 = vadd.f32 1e-05, %v55_v24 }
 0x12e   :  { %3389 = vrsqrt.f32 %v57_v25 }
 0x134   :  { %v3388_v26 = vpop.eup %3387 }
 0x135   :  { %v60_v28 = vmul.f32 %v3388_v26, %v44_v6 }
 0x137   :  { %v66_v30 = vmul.f32 %v2685_v27, %v60_v28 }
 0x138   :  { %v3390_v31 = vpop.eup %3389 }
 0x139   :  { %v61_v32 = vmul.f32 %v3390_v31, %v45_v10  ;;  %v3594_v33 = vadd.f32 %v2686_v29, %v66_v30 }
 0x13b   :  { %v67_v34 = vmul.f32 %v2685_v27, %v61_v32  ;;  %2923 = vmatprep.mubr.msk.f32.mxu1 %vm34_vm0, %v3594_v33 }
 0x13d   :  { %v3598_v35 = vadd.f32 %v2686_v29, %v67_v34 }
 0x13f   :  { %2924 = vmatmul.mubr.msk.f32.vlgmr.msra.gmra.mrb[0].mxu1 %vm34_vm0, %v3598_v35 }
 0x212   :  { %v2925_v37 = vpop.f32.mrb[0].mxu1 }
 0x213   :  { %v3605_v38 = vadd.f32 %v2925_v37, %v2687_v36  ;;  %v157_v39 = vpop.f32.mrb[1].mxu1 }
 0x214   :  { %v3607_v40 = vadd.f32 %v2687_v36, %v157_v39 }
 0x216   :  { %2930 = vmatprep.mubr.msk.f32.mxu1 %vm172_vm1, %v3607_v40  ;;  %v3613_v41 = vpack.i.bf16 %v3605_v38, %v3607_v40 }
 0x218   :  { %3313 = vrot.lane.b32.xlu1 %v3613_v41, %s3505_s1  ;;  %3308 = vrot.lane.b32.xlu0 %v3613_v41, %s3506_s22 }
 0x21c   :  { %368 = vrot.lane.b32.xlu1 %v3607_v40, %s3507_s23 }
 0x220   :  { %370 = vrot.lane.b32.xlu1 %v3605_v38, %s3507_s23 }
 0x28a   :  { %v3314_v42 = vpop.permute.xlu1 %3313  ;;  %v3309_v43 = vpop.permute.xlu0 %3308 }
 0x28b   :  { %v3316_v44 = vunpack.i.h.bf16 %v3314_v42  ;;  %v3315_v45 = vunpack.i.l.bf16 %v3314_v42  ;;  %v3311_v46 = vunpack.i.h.bf16 %v3309_v43  ;;  %v3310_v47 = vunpack.i.l.bf16 %v3309_v43 }
 0x28d   :  { %v3139_v49 = vpack.c.bf16 %v3311_v46, %v3310_v47  ;;  %v3149_v50 = vpack.c.bf16 %v3316_v44, %v3315_v45 }
 0x28e   :  { %v369_v51 = vpop.permute.xlu1 %368 }
 0x28f   :  { %3141 = vmatprep.subr.msk.bf16.mxu1 %vm3625_vm2, %v3139_v49 }
 0x290   :  { %3144 = vmatpush3.bf16.xpose.msk.msra.mxu1 %vm3625_vm2, %v3139_v49 }
 0x291   :  { %3151 = vmatprep.subr.msk.bf16.mxu1 %vm3625_vm2, %v3149_v50 }
 0x292   :  { %v371_v52 = vpop.permute.xlu1 %370 }
 0x297   :  { %2931 = vmatmul.mubr.msk.f32.vlgmr.msra.gmra.mrb[2].mxu1 %vm172_vm1, %v3605_v38 }
 0x298   :  { %3154 = vmatpush3.bf16.xpose.msk.msra.mxu1 %vm3625_vm2, %v3149_v50  ;;  %2944 = vmatprep.mubr.msk.f32.mxu1 %vm172_vm1, %v369_v51 }
 0x29f   :  { %2945 = vmatmul.mubr.msk.f32.vlgmr.msra.gmra.mrb[4].mxu1 %vm172_vm1, %v371_v52 }
 0x36a   :  { %v2932_v55 = vpop.f32.mrb[2].mxu1 }
 0x36b   :  { %v253_v56 = vadd.f32 %v2932_v55, %v3644_v53  ;;  %v247_v57 = vpop.f32.mrb[3].mxu1 }
 0x36c   :  { %v248_v58 = vadd.f32 %v247_v57, %v3649_v54 }
 0x36d   :  { %v260_v59 = vsel %vm256_vm3, %v253_v56, -inf }
 0x36e   :  { %261 = vmax.xlane.f32.xlu1 %v260_v59  ;;  %v257_v60 = vsel %vm256_vm3, %v248_v58, -inf }
 0x36f   :  { %258 = vmax.xlane.f32.xlu0 %v257_v60 }
 0x372   :  { %v2946_v61 = vpop.f32.mrb[4].mxu1 }
 0x373   :  { %v450_v62 = vpop.f32.mrb[5].mxu1  ;;  %v456_v0 = vadd.f32 %v2946_v61, %v3644_v53 }
 0x374   :  { %v451_v63 = vadd.f32 %v450_v62, %v3649_v54 }
 0x375   :  { %v462_v2 = vsel %vm256_vm3, %v456_v0, -inf }
 0x376   :  { %v459_v1 = vsel %vm256_vm3, %v451_v63, -inf }
 0x377   :  { %460 = vmax.xlane.f32.xlu0 %v459_v1 }
 0x37b   :  { %463 = vmax.xlane.f32.xlu0 %v462_v2 }
 0x3fb   :  { %v262_v3 = vpop.xlane.xlu1 %261 }
 0x3fc   :  { %v264_v4 = vsub.f32 %v253_v56, %v262_v3  ;;  %v259_v5 = vpop.xlane.xlu0 %258 }
 0x3fd   :  { %v263_v6 = vsub.f32 %v248_v58, %v259_v5 }
 0x3fe   :  { %v267_v7 = vmul.f32 1.442695, %v264_v4 }
 0x3ff   :  { %v265_v8 = vmul.f32 1.442695, %v263_v6 }
 0x400   :  { %3391 = vpow2.f32 %v267_v7 }
 0x401   :  { %3393 = vpow2.f32 %v265_v8 }
 0x404   :  { %v461_v9 = vpop.xlane.xlu0 %460 }
 0x405   :  { %v465_v10 = vsub.f32 %v451_v63, %v461_v9 }
 0x407   :  { %v467_v11 = vmul.f32 1.442695, %v465_v10 }
 0x408   :  { %v464_v12 = vpop.xlane.xlu0 %463 }
 0x409   :  { %3395 = vpow2.f32 %v467_v11  ;;  %v466_v13 = vsub.f32 %v456_v0, %v464_v12 }
 0x40a   :  { %v3392_v14 = vpop.eup %3391 }
 0x40b   :  { %v3394_v15 = vpop.eup %3393  ;;  %v469_v16 = vmul.f32 1.442695, %v466_v13  ;;  %v272_v17 = vsel %vm256_vm3, %v3392_v14, 0.0 }
 0x40c   :  { %273 = vadd.xlane.f32.xlu1 %v272_v17  ;;  %v269_v18 = vsel %vm256_vm3, %v3394_v15, 0.0 }
 0x40d   :  { %3397 = vpow2.f32 %v469_v16  ;;  %270 = vadd.xlane.f32.xlu0 %v269_v18 }
 0x413   :  { %v3396_v19 = vpop.eup %3395 }
 0x414   :  { %v471_v20 = vsel %vm256_vm3, %v3396_v19, 0.0 }
 0x415   :  { %472 = vadd.xlane.f32.xlu0 %v471_v20 }
 0x417   :  { %v3398_v21 = vpop.eup %3397 }
 0x418   :  { %v474_v22 = vsel %vm256_vm3, %v3398_v21, 0.0 }
 0x419   :  { %475 = vadd.xlane.f32.xlu1 %v474_v22 }
 0x42a   :  { %3323 = vrot.lane.b32.xlu1 %v3613_v41, %s3508_s28 }
 0x42b   :  { %3318 = vrot.lane.b32.xlu0 %v3613_v41, %s3509_s29 }
 0x42e   :  { %3328 = vrot.lane.b32.xlu1 %v3613_v41, %s3510_s30 }
 0x42f   :  { %581 = vrot.lane.b32.xlu0 %v3605_v38, %s3511_s0 }
 0x432   :  { %579 = vrot.lane.b32.xlu1 %v3607_v40, %s3511_s0 }
 0x499   :  { %v274_v24 = vpop.xlane.xlu1 %273 }
 0x49a   :  { %v271_v23 = vpop.xlane.xlu0 %270 }
 0x49b   :  { %3399 = vrcp.f32 %v271_v23 }
 0x49c   :  { %3401 = vrcp.f32 %v274_v24 }
 0x4a2   :  { %v473_v25 = vpop.xlane.xlu0 %472 }
 0x4a3   :  { %3403 = vrcp.f32 %v473_v25 }
 0x4a5   :  { %v3400_v26 = vpop.eup %3399 }
 0x4a6   :  { %v476_v27 = vpop.xlane.xlu1 %475  ;;  %v3319_v28 = vpop.permute.xlu0 %3318  ;;  %v276_v29 = vmul.f32 %v3400_v26, %v3394_v15 }
 0x4a7   :  { %3405 = vrcp.f32 %v476_v27  ;;  %v3321_v30 = vunpack.i.h.bf16 %v3319_v28  ;;  %v3320_v31 = vunpack.i.l.bf16 %v3319_v28  ;;  %v3402_v34 = vpop.eup %3401 }
 0x4a8   :  { %2937 = vmatprep.mubr.msk.f32.mxu0 %vm256_vm3, %v276_v29  ;;  %v278_v44 = vmul.f32 %v3402_v34, %v3392_v14 }
 0x4a9   :  { %v3145_v32 = vpack.c.bf16 %v3321_v30, %v3320_v31 }
 0x4aa   :  { %v3324_v36 = vpop.permute.xlu1 %3323  ;;  %v582_v56 = vpop.permute.xlu0 %581 }
 0x4ab   :  { %v3326_v37 = vunpack.i.h.bf16 %v3324_v36  ;;  %v3325_v39 = vunpack.i.l.bf16 %v3324_v36  ;;  %3146 = vmatprep.subr.bf16.mxu0 %v3145_v32 }
 0x4ac   :  { %3148 = vmatpush3.bf16.msra.mxu0 %v3145_v32 }
 0x4ad   :  { %v3404_v42 = vpop.eup %3403  ;;  %v3155_v43 = vpack.c.bf16 %v3326_v37, %v3325_v39 }
 0x4ae   :  { %v3329_v45 = vpop.permute.xlu1 %3328  ;;  %v478_v46 = vmul.f32 %v3404_v42, %v3396_v19 }
 0x4af   :  { %v3331_v47 = vunpack.i.h.bf16 %v3329_v45  ;;  %v3330_v49 = vunpack.i.l.bf16 %v3329_v45  ;;  %2938 = vmatmul.mubr.msk.f32.vlgmr.msra.gmra.mrb[0].mxu0 %vm256_vm3, %v278_v44  ;;  %3156 = vmatprep.subr.bf16.mxu0 %v3155_v43 }
 0x4b0   :  { %3158 = vmatpush3.bf16.msra.mxu0 %v3155_v43  ;;  %2951 = vmatprep.mubr.msk.f32.mxu0 %vm256_vm3, %v478_v46 }
 0x4b1   :  { %v3406_v50 = vpop.eup %3405  ;;  %v3159_v51 = vpack.c.bf16 %v3331_v47, %v3330_v49 }
 0x4b2   :  { %v480_v52 = vmul.f32 %v3406_v50, %v3398_v21  ;;  %v580_v55 = vpop.permute.xlu1 %579 }
 0x4b3   :  { %3161 = vmatprep.subr.msk.bf16.mxu0 %vm3625_vm2, %v3159_v51 }
 0x4b4   :  { %2952 = vmatmul.mubr.msk.f32.vlgmr.msra.gmra.mrb[2].mxu0 %vm256_vm3, %v480_v52 }
 0x4b5   :  { %2958 = vmatprep.mubr.msk.f32.mxu0 %vm172_vm1, %v580_v55 }
 0x4b9   :  { %3164 = vmatpush3.bf16.xpose.msk.msra.mxu0 %vm3625_vm2, %v3159_v51 }
 0x4c0   :  { %2959 = vmatmul.mubr.msk.f32.vlgmr.msra.gmra.mrb[4].mxu0 %vm172_vm1, %v582_v56 }
 0x582   :  { %v2939_v57 = vpop.f32.mrb[0].mxu0 }
 0x583   :  { %367 = vst.msk [vmem:[#allocation2 + $0x8] sm:$0xff] %vm172_vm1, %v2939_v57  ;;  %v357_v58 = vpop.f32.mrb[1].mxu0 }
 0x584   :  { %366 = vst.msk [vmem:[#allocation2] sm:$0xff] %vm172_vm1, %v357_v58 }
 0x587   :  { %v3685_v59 = vpop.f32.mrb[2].mxu0 }
 0x588   :  { %v3687_v60 = vpop.f32.mrb[3].mxu0 }
 0x593   :  { %v2960_v61 = vpop.f32.mrb[4].mxu0 }
 0x594   :  { %v667_v62 = vadd.f32 %v2960_v61, %v3644_v53  ;;  %v661_v63 = vpop.f32.mrb[5].mxu0 }
 0x595   :  { %v662_v0 = vadd.f32 %v661_v63, %v3649_v54 }
 0x596   :  { %v673_v1 = vsel %vm256_vm3, %v667_v62, -inf }
 0x597   :  { %674 = vmax.xlane.f32.xlu0 %v673_v1  ;;  %v670_v2 = vsel %vm256_vm3, %v662_v0, -inf }
 0x598   :  { %671 = vmax.xlane.f32.xlu1 %v670_v2 }
 0x5a9   :  { %3333 = vrot.lane.b32.xlu1 %v3613_v41, %s3512_s9 }
 0x5ad   :  { %790 = vrot.lane.b32.xlu1 %v3607_v40, %s3513_s10 }
 0x5b1   :  { %792 = vrot.lane.b32.xlu1 %v3605_v38, %s3513_s10 }
 0x624   :  { %v675_v3 = vpop.xlane.xlu0 %674 }
 0x625   :  { %v677_v4 = vsub.f32 %v667_v62, %v675_v3  ;;  %v672_v5 = vpop.xlane.xlu1 %671  ;;  %v1004_v3 = vld [vmem:[%s4063_s4 + $0x8] sm:$0xff] }
 0x626   :  { %v676_v6 = vsub.f32 %v662_v0, %v672_v5  ;;  %v1005_v5 = vld [vmem:[%s4063_s4 + $0x10] sm:$0xff] }
 0x627   :  { %v680_v7 = vmul.f32 1.442695, %v677_v4 }
 0x628   :  { %v678_v8 = vmul.f32 1.442695, %v676_v6  ;;  %v1006_v6 = vld [vmem:[%s4063_s4 + $0x18] sm:$0xff] }
 0x629   :  { %3407 = vpow2.f32 %v680_v7  ;;  %v3334_v9 = vpop.permute.xlu1 %3333  ;;  %v3183_v7 = vpack.c.bf16 %v1006_v6, %v1005_v5  ;;  %v2719_v6 = vld [vmem:[%s4066_s7 + $0x4] ss:$0 sm:$0xff] }
 0x62a   :  { %v3336_v10 = vunpack.i.h.bf16 %v3334_v9  ;;  %v3335_v11 = vunpack.i.l.bf16 %v3334_v9  ;;  %3409 = vpow2.f32 %v678_v8 }
 0x62c   :  { %v3165_v12 = vpack.c.bf16 %v3336_v10, %v3335_v11 }
 0x62d   :  { %v791_v25 = vpop.permute.xlu1 %790 }
 0x62e   :  { %3166 = vmatprep.subr.bf16.mxu1 %v3165_v12 }
 0x62f   :  { %3168 = vmatpush3.bf16.msra.mxu1 %v3165_v12 }
 0x631   :  { %v793_v26 = vpop.permute.xlu1 %792 }
 0x633   :  { %v3408_v13 = vpop.eup %3407 }
 0x634   :  { %v685_v40 = vsel %vm256_vm3, %v3408_v13, 0.0  ;;  %v3410_v14 = vpop.eup %3409 }
 0x635   :  { %686 = vadd.xlane.f32.xlu0 %v685_v40  ;;  %v682_v38 = vsel %vm256_vm3, %v3410_v14, 0.0  ;;  %v2714_v40 = vld [vmem:[%s4066_s7 + $0x1] ss:$0 sm:$0xff] }
 0x639   :  { %683 = vadd.xlane.f32.xlu0 %v682_v38 }
 0x64f   :  { %3338 = vrot.lane.b32.xlu0 %v3613_v41, %s3514_s11 }
 0x6c2   :  { %v687_v15 = vpop.xlane.xlu0 %686 }
 0x6c3   :  { %3411 = vrcp.f32 %v687_v15 }
 0x6c6   :  { %v684_v16 = vpop.xlane.xlu0 %683 }
 0x6c7   :  { %3413 = vrcp.f32 %v684_v16 }
 0x6ca   :  { %v3339_v17 = vpop.permute.xlu0 %3338 }
 0x6cb   :  { %v3341_v18 = vunpack.i.h.bf16 %v3339_v17  ;;  %v3340_v19 = vunpack.i.l.bf16 %v3339_v17 }
 0x6cd   :  { %v3169_v20 = vpack.c.bf16 %v3341_v18, %v3340_v19  ;;  %v3412_v21 = vpop.eup %3411 }
 0x6ce   :  { %v691_v24 = vmul.f32 %v3412_v21, %v3408_v13 }
 0x6cf   :  { %3171 = vmatprep.subr.msk.bf16.mxu1 %vm3625_vm2, %v3169_v20 }
 0x6d1   :  { %v3414_v22 = vpop.eup %3413 }
 0x6d2   :  { %v689_v23 = vmul.f32 %v3414_v22, %v3410_v14 }
 0x6d4   :  { %2965 = vmatprep.mubr.msk.f32.mxu1 %vm256_vm3, %v689_v23 }
 0x6d5   :  { %2966 = vmatmul.mubr.msk.f32.vlgmr.msra.gmra.mrb[6].mxu1 %vm256_vm3, %v691_v24 }
 0x6d6   :  { %3174 = vmatpush3.bf16.xpose.msk.msra.mxu1 %vm3625_vm2, %v3169_v20  ;;  %2972 = vmatprep.mubr.msk.f32.mxu1 %vm172_vm1, %v791_v25 }
 0x6dd   :  { %2973 = vmatmul.mubr.msk.f32.vlgmr.msra.gmra.mrb[8].mxu1 %vm172_vm1, %v793_v26 }
 0x7a8   :  { %v2967_v27 = vpop.f32.mrb[6].mxu1 }
 0x7a9   :  { %v770_v28 = vpop.f32.mrb[7].mxu1 }
 0x7b0   :  { %v2974_v29 = vpop.f32.mrb[8].mxu1 }
 0x7b1   :  { %v878_v30 = vadd.f32 %v2974_v29, %v3644_v53  ;;  %v872_v31 = vpop.f32.mrb[9].mxu1 }
 0x7b2   :  { %v873_v32 = vadd.f32 %v872_v31, %v3649_v54 }
 0x7b3   :  { %v884_v34 = vsel %vm256_vm3, %v878_v30, -inf }
 0x7b4   :  { %885 = vmax.xlane.f32.xlu0 %v884_v34  ;;  %v881_v36 = vsel %vm256_vm3, %v873_v32, -inf  ;;  %v1138_v34 = vld [vmem:[%s4064_s5 + $0x18] sm:$0xff] }
 0x7b5   :  { %882 = vmax.xlane.f32.xlu1 %v881_v36 }
 0x7c6   :  { %3343 = vrot.lane.b32.xlu1 %v3613_v41, %s3515_s12 }
 0x7ca   :  { %572 = vrot.lane.b32.xlu1 %v3685_v59, %s3516_s13 }
 0x7ce   :  { %781 = vrot.lane.b32.xlu1 %v770_v28, %s3517_s14 }
 0x7d2   :  { %783 = vrot.lane.b32.xlu1 %v2967_v27, %s3517_s14 }
 0x841   :  { %v886_v37 = vpop.xlane.xlu0 %885 }
 0x842   :  { %v888_v39 = vsub.f32 %v878_v30, %v886_v37  ;;  %v883_v42 = vpop.xlane.xlu1 %882  ;;  %v1136_v30 = vld [vmem:[%s4064_s5 + $0x8] sm:$0xff] }
 0x843   :  { %v887_v43 = vsub.f32 %v873_v32, %v883_v42  ;;  %v1137_v32 = vld [vmem:[%s4064_s5 + $0x10] sm:$0xff] }
 0x844   :  { %v891_v44 = vmul.f32 1.442695, %v888_v39  ;;  %v3191_v36 = vpack.c.bf16 %v1138_v34, %v1137_v32 }
 0x845   :  { %v889_v45 = vmul.f32 1.442695, %v887_v43 }
 0x846   :  { %v3344_v46 = vpop.permute.xlu1 %3343 }
 0x847   :  { %3415 = vpow2.f32 %v889_v45  ;;  %v3346_v47 = vunpack.i.h.bf16 %v3344_v46  ;;  %v3345_v49 = vunpack.i.l.bf16 %v3344_v46 }
 0x848   :  { %3417 = vpow2.f32 %v891_v44 }
 0x849   :  { %v3175_v41 = vpack.c.bf16 %v3346_v47, %v3345_v49  ;;  %v2717_v47 = vld [vmem:[%s4066_s7 + $0x2] ss:$0 sm:$0xff] }
 0x84a   :  { %v573_v50 = vpop.permute.xlu1 %572 }
 0x84b   :  { %578 = vst.msk [vmem:[#allocation2 + $0x8] sm:$0xff] %vm576_vm4, %v573_v50  ;;  %3176 = vmatprep.subr.bf16.mxu0 %v3175_v41 }
 0x84c   :  { %3178 = vmatpush3.bf16.msra.mxu0 %v3175_v41  ;;  %v2718_v41 = vld [vmem:[%s4066_s7 + $0x3] ss:$0 sm:$0xff] }
 0x84e   :  { %v782_v51 = vpop.permute.xlu1 %781 }
 0x851   :  { %v3416_v52 = vpop.eup %3415 }
 0x852   :  { %v784_v55 = vpop.permute.xlu1 %783  ;;  %v893_v56 = vsel %vm256_vm3, %v3416_v52, 0.0  ;;  %v3418_v57 = vpop.eup %3417 }
 0x853   :  { %789 = vst.msk [vmem:[#allocation2 + $0x8] sm:$0xff] %vm787_vm5, %v784_v55  ;;  %894 = vadd.xlane.f32.xlu0 %v893_v56  ;;  %v896_v58 = vsel %vm256_vm3, %v3418_v57, 0.0 }
 0x857   :  { %897 = vadd.xlane.f32.xlu0 %v896_v58  ;;  %v1235_v58 = vld [vmem:[%s4065_s6] sm:$0xff] }
 0x86d   :  { %570 = vrot.lane.b32.xlu0 %v3687_v60, %s3516_s13  ;;  %v1003_v60 = vld [vmem:[%s4063_s4] sm:$0xff] }
 0x86e   :  { %v3179_v4 = vpack.c.bf16 %v1004_v3, %v1003_v60  ;;  %v1241_v3 = vld [vmem:[%s4065_s6 + $0x30] sm:$0xff] }
 0x870   :  { %3180 = vmatprep.subr.bf16.mxu0 %v3179_v4 }
 0x8e0   :  { %v895_v59 = vpop.xlane.xlu0 %894 }
 0x8e1   :  { %3419 = vrcp.f32 %v895_v59  ;;  %v1236_v59 = vld [vmem:[%s4065_s6 + $0x8] sm:$0xff] }
 0x8e4   :  { %v898_v61 = vpop.xlane.xlu0 %897 }
 0x8e5   :  { %3421 = vrcp.f32 %v898_v61  ;;  %v3195_v61 = vpack.c.bf16 %v1236_v59, %v1235_v58 }
 0x8e8   :  { %v571_v62 = vpop.permute.xlu0 %570 }
 0x8e9   :  { %577 = vst.msk [vmem:[#allocation2] sm:$0xff] %vm576_vm4, %v571_v62  ;;  %v1237_v62 = vld [vmem:[%s4065_s6 + $0x10] sm:$0xff] }
 0x8ea   :  { %788 = vst.msk [vmem:[#allocation2] sm:$0xff] %vm787_vm5, %v782_v51 }
 0x8eb   :  { %v3420_v63 = vpop.eup %3419 }
 0x8ec   :  { %v900_v0 = vmul.f32 %v3420_v63, %v3416_v52  ;;  %v1238_v63 = vld [vmem:[%s4065_s6 + $0x18] sm:$0xff] }
 0x8ee   :  { %2979 = vmatprep.mubr.msk.f32.mxu0 %vm256_vm3, %v900_v0  ;;  %v3199_v0 = vpack.c.bf16 %v1238_v63, %v1237_v62 }
 0x8ef   :  { %v3422_v1 = vpop.eup %3421 }
 0x8f0   :  { %v902_v2 = vmul.f32 %v3422_v1, %v3418_v57  ;;  %v1239_v1 = vld [vmem:[%s4065_s6 + $0x20] sm:$0xff] }
 0x8f2   :  { %2980 = vmatmul.mubr.msk.f32.vlgmr.msra.gmra.mrb[6].mxu0 %vm256_vm3, %v902_v2  ;;  %v1240_v2 = vld [vmem:[%s4065_s6 + $0x28] sm:$0xff] }
 0x8f3   :  { %3182 = vmatpush3.bf16.msra.mxu0 %v3179_v4  ;;  %v3203_v60 = vpack.c.bf16 %v1240_v2, %v1239_v1  ;;  %v1242_v4 = vld [vmem:[%s4065_s6 + $0x38] sm:$0xff]  ;;  %v2732_v2 = vld [vmem:[%s4066_s7 + $0x8] ss:$0 sm:$0xff] }
 0x8f4   :  { %3184 = vmatprep.subr.bf16.mxu0 %v3183_v7  ;;  %v3207_v5 = vpack.c.bf16 %v1242_v4, %v1241_v3 }
 0x8f7   :  { %3186 = vmatpush3.bf16.msra.mxu0 %v3183_v7 }
 0x8f8   :  { %3196 = vmatprep.subr.bf16.mxu0 %v3195_v61 }
 0x9c5   :  { %v2981_v8 = vpop.f32.mrb[6].mxu0 }
 0x9c6   :  { %994 = vrot.lane.b32.xlu1 %v2981_v8, %s3518_s25  ;;  %v981_v9 = vpop.f32.mrb[7].mxu0 }
 0x9c7   :  { %992 = vrot.lane.b32.xlu0 %v981_v9, %s3518_s25 }
 0xa38   :  { %v995_v10 = vpop.permute.xlu1 %994 }
 0xa39   :  { %1000 = vst.msk [vmem:[#allocation2 + $0x8] sm:$0xff] %vm998_vm6, %v995_v10  ;;  %v993_v11 = vpop.permute.xlu0 %992 }
 0xa3a   :  { %999 = vst.msk [vmem:[#allocation2] sm:$0xff] %vm998_vm6, %v993_v11 }
 0xa40   :  { %v1002_v13 = vld [vmem:[#allocation2 + $0x8] sm:$0xff] }
 0xa41   :  { %v1001_v12 = vld [vmem:[#allocation2] sm:$0xff] }
 0xa42   :  { %2990 = vmatprep.mubr.msk.f32.mxu0 %vm34_vm0, %v1001_v12 }
 0xa43   :  { %2991 = vmatmul.mubr.msk.f32.vlgmr.msra.gmra.mrb[8].mxu0 %vm34_vm0, %v1002_v13 }
 0xa44   :  { %3198 = vmatpush3.bf16.msra.mxu0 %v3195_v61  ;;  %v2726_v61 = vld [vmem:[%s4066_s7 + $0x7] ss:$0 sm:$0xff] }
 0xa45   :  { %3200 = vmatprep.subr.bf16.mxu0 %v3199_v0 }
 0xa48   :  { %3202 = vmatpush3.bf16.msra.mxu0 %v3199_v0 }
 0xa49   :  { %3204 = vmatprep.subr.bf16.mxu0 %v3203_v60 }
 0xa4c   :  { %3206 = vmatpush3.bf16.msra.mxu0 %v3203_v60 }
 0xa4d   :  { %3208 = vmatprep.subr.bf16.mxu0 %v3207_v5 }
 0xa50   :  { %3210 = vmatpush3.bf16.msra.mxu0 %v3207_v5 }
 0xb16   :  { %v2992_v14 = vpop.f32.mrb[8].mxu0 }
 0xb17   :  { %v1090_v38 = vadd.f32 %v2992_v14, %v2714_v40  ;;  %v1084_v15 = vpop.f32.mrb[9].mxu0 }
 0xb18   :  { %v1085_v16 = vadd.f32 %v2714_v40, %v1084_v15 }
 0xb19   :  { %v1094_v17 = vadd.f32 %v1090_v38, %v3598_v35 }
 0xb1a   :  { %v1093_v18 = vadd.f32 %v1085_v16, %v3594_v33  ;;  %v1135_v33 = vld [vmem:[%s4064_s5] sm:$0xff] }
 0xb1b   :  { %v1100_v19 = vsel %vm34_vm0, %v1094_v17, 0.0  ;;  %v3187_v31 = vpack.c.bf16 %v1136_v30, %v1135_v33 }
 0xb1c   :  { %1101 = vadd.xlane.f32.xlu1 %v1100_v19  ;;  %v1097_v20 = vsel %vm34_vm0, %v1093_v18, 0.0  ;;  %v2722_v19 = vld [vmem:[%s4066_s7 + $0x5] ss:$0 sm:$0xff] }
 0xb1d   :  { %1098 = vadd.xlane.f32.xlu0 %v1097_v20  ;;  %3188 = vmatprep.subr.bf16.mxu1 %v3187_v31 }
 0xb1e   :  { %3190 = vmatpush3.bf16.msra.mxu1 %v3187_v31 }
 0xb1f   :  { %3192 = vmatprep.subr.bf16.mxu1 %v3191_v36 }
 0xb22   :  { %3194 = vmatpush3.bf16.msra.mxu1 %v3191_v36 }
 0xba9   :  { %v1102_v21 = vpop.xlane.xlu1 %1101 }
 0xbaa   :  { %v1104_v22 = vmul.f32 0.03125, %v1102_v21  ;;  %v1099_v23 = vpop.xlane.xlu0 %1098 }
 0xbab   :  { %v1103_v24 = vmul.f32 0.03125, %v1099_v23 }
 0xbac   :  { %v1106_v25 = vsub.f32 %v1094_v17, %v1104_v22 }
 0xbad   :  { %v1105_v26 = vsub.f32 %v1093_v18, %v1103_v24 }
 0xbae   :  { %v1108_v29 = vmul.f32 %v1106_v25, %v1106_v25 }
 0xbaf   :  { %v1107_v27 = vmul.f32 %v1105_v26, %v1105_v26 }
 0xbb0   :  { %v1112_v35 = vsel %vm34_vm0, %v1108_v29, 0.0 }
 0xbb1   :  { %v1109_v28 = vsel %vm34_vm0, %v1107_v27, 0.0 }
 0xbb2   :  { %1110 = vadd.xlane.f32.xlu0 %v1109_v28 }
 0xbb6   :  { %1113 = vadd.xlane.f32.xlu0 %v1112_v35 }
 0xc3f   :  { %v1111_v37 = vpop.xlane.xlu0 %1110 }
 0xc40   :  { %v1115_v39 = vmul.f32 0.03125, %v1111_v37 }
 0xc42   :  { %v1117_v42 = vadd.f32 1e-05, %v1115_v39  ;;  %v2727_v39 = vld [vmem:[%s4062_s3 + $0x20] sm:$0xff] }
 0xc43   :  { %v1114_v43 = vpop.xlane.xlu0 %1113 }
 0xc44   :  { %3423 = vrsqrt.f32 %v1117_v42  ;;  %v1116_v44 = vmul.f32 0.03125, %v1114_v43  ;;  %v2728_v42 = vld [vmem:[%s4062_s3 + $0x28] sm:$0xff] }
 0xc45   :  { %v3211_v43 = vpack.c.bf16 %v2728_v42, %v2727_v39 }
 0xc46   :  { %v1118_v45 = vadd.f32 1e-05, %v1116_v44  ;;  %v2729_v44 = vld [vmem:[%s4062_s3 + $0x30] sm:$0xff] }
 0xc47   :  { %3212 = vmatprep.subr.bf16.mxu1 %v3211_v43 }
 0xc48   :  { %3425 = vrsqrt.f32 %v1118_v45  ;;  %v2730_v45 = vld [vmem:[%s4062_s3 + $0x38] sm:$0xff]  ;;  %s3519_s3 = smov [#allocation3]  }
 0xc49   :  { %s2674_s17 = sshll.u32 %s3519_s3, 4  ;;  %s2675_s17 = int_to_ptr.vmem [resolvable:$true] %s2674_s17 }
 0xc4a   :  { %s3481_s18 = scalar_lea.vmem %s2675_s17, 256  ;;  %p3486_p1 = scmp.lt.s32.totalorder %s2675_s17, %s2675_s17 }
 0xc4b   :  { %p3482_p0 = scmp.ne.s32.totalorder %s2675_s17, %s3481_s18  ;;  %p3487_p2 = scmp.lt.s32.totalorder %s3481_s18, %s3481_s18 }
 0xc4d   :  { %p3488_p3 = por %p3487_p2, %p3486_p1 }
 0xc4e   :  { %v3424_v46 = vpop.eup %3423 }
 0xc4f   :  { %v1121_v49 = vmul.f32 %v3424_v46, %v1105_v26  ;;  %v3215_v46 = vpack.c.bf16 %v2730_v45, %v2729_v44  ;;  %p3489_p4 = pnand %p3488_p3, %p3482_p0 }
 0xc51   :  { %v1127_v50 = vmul.f32 %v2717_v47, %v1121_v49 }
 0xc52   :  { %v3426_v51 = vpop.eup %3425 }
 0xc53   :  { %v1122_v52 = vmul.f32 %v3426_v51, %v1106_v25  ;;  %v1133_v55 = vadd.f32 %v2718_v41, %v1127_v50 }
 0xc55   :  { %v1128_v56 = vmul.f32 %v2717_v47, %v1122_v52  ;;  %3001 = vmatprep.mubr.msk.f32.mxu1 %vm34_vm0, %v1133_v55 }
 0xc57   :  { %v1134_v57 = vadd.f32 %v2718_v41, %v1128_v56  ;;  %v2725_v56 = vld [vmem:[%s4066_s7 + $0x6] ss:$0 sm:$0xff] }
 0xc59   :  { %3002 = vmatmul.mubr.msk.f32.vlgmr.msra.gmra.mrb[10].mxu1 %vm34_vm0, %v1134_v57 }
 0xc5a   :  { %3214 = vmatpush3.bf16.msra.mxu1 %v3211_v43 }
 0xc5b   :  { %3216 = vmatprep.subr.bf16.mxu1 %v3215_v46 }
 0xc5e   :  { %3218 = vmatpush3.bf16.msra.mxu1 %v3215_v46 }
 0xd2c   :  { %v3003_v7 = vpop.f32.mrb[10].mxu1 }
 0xd2d   :  { %v1222_v8 = vadd.f32 %v3003_v7, %v2719_v6  ;;  %v1216_v9 = vpop.f32.mrb[11].mxu1 }
 0xd2e   :  { %v1217_v10 = vadd.f32 %v2719_v6, %v1216_v9 }
 0xd2f   :  { %v1228_v11 = vmul.f32 0.70710677, %v1222_v8  ;;  %v1226_v16 = vmul.f32 0.5, %v1222_v8 }
 0xd30   :  { %v1227_v12 = vmul.f32 0.70710677, %v1217_v10  ;;  %v1225_v38 = vmul.f32 0.5, %v1217_v10 }
 0xd31   :  { %3427 = verf.f32 %v1228_v11 }
 0xd32   :  { %3429 = verf.f32 %v1227_v12 }
 0xd3b   :  { %v3428_v13 = vpop.eup %3427 }
 0xd3c   :  { %v3430_v40 = vpop.eup %3429  ;;  %v1232_v14 = vadd.f32 1.0, %v3428_v13 }
 0xd3d   :  { %v1231_v15 = vadd.f32 1.0, %v3430_v40 }
 0xd3e   :  { %v1234_v18 = vmul.f32 %v1232_v14, %v1226_v16 }
 0xd3f   :  { %v1233_v17 = vmul.f32 %v1231_v15, %v1225_v38 }
 0xd41   :  { %3020 = vmatprep.mubr.msk.f32.mxu0 %vm1248_vm7, %v1233_v17 }
 0xd42   :  { %3021 = vmatmul.mubr.msk.f32.vlgmr.msra.gmra.mrb[10].mxu0 %vm1248_vm7, %v1234_v18 }
 0xe15   :  { %v3022_v20 = vpop.f32.mrb[10].mxu0 }
 0xe16   :  { %v1327_v21 = vadd.f32 %v3022_v20, %v2722_v19  ;;  %v1321_v22 = vpop.f32.mrb[11].mxu0 }
 0xe17   :  { %v1322_v23 = vadd.f32 %v2722_v19, %v1321_v22 }
 0xe18   :  { %v1331_v24 = vadd.f32 %v1327_v21, %v1134_v57 }
 0xe19   :  { %v1330_v25 = vadd.f32 %v1322_v23, %v1133_v55 }
 0xe1a   :  { %v1337_v26 = vsel %vm34_vm0, %v1331_v24, 0.0 }
 0xe1b   :  { %1338 = vadd.xlane.f32.xlu1 %v1337_v26  ;;  %v1334_v27 = vsel %vm34_vm0, %v1330_v25, 0.0 }
 0xe1c   :  { %1335 = vadd.xlane.f32.xlu0 %v1334_v27 }
 0xea8   :  { %v1339_v28 = vpop.xlane.xlu1 %1338 }
 0xea9   :  { %v1341_v29 = vmul.f32 0.03125, %v1339_v28  ;;  %v1336_v35 = vpop.xlane.xlu0 %1335 }
 0xeaa   :  { %v1340_v33 = vmul.f32 0.03125, %v1336_v35 }
 0xeab   :  { %v1343_v30 = vsub.f32 %v1331_v24, %v1341_v29 }
 0xeac   :  { %v1342_v31 = vsub.f32 %v1330_v25, %v1340_v33 }
 0xead   :  { %v1345_v32 = vmul.f32 %v1343_v30, %v1343_v30 }
 0xeae   :  { %v1344_v34 = vmul.f32 %v1342_v31, %v1342_v31 }
 0xeaf   :  { %v1349_v36 = vsel %vm34_vm0, %v1345_v32, 0.0 }
 0xeb0   :  { %1350 = vadd.xlane.f32.xlu1 %v1349_v36  ;;  %v1346_v37 = vsel %vm34_vm0, %v1344_v34, 0.0 }
 0xeb1   :  { %1347 = vadd.xlane.f32.xlu0 %v1346_v37 }
 0xf3d   :  { %v1351_v47 = vpop.xlane.xlu1 %1350 }
 0xf3e   :  { %v1353_v49 = vmul.f32 0.03125, %v1351_v47  ;;  %v1348_v41 = vpop.xlane.xlu0 %1347 }
 0xf3f   :  { %v1352_v50 = vmul.f32 0.03125, %v1348_v41 }
 0xf40   :  { %v1355_v51 = vadd.f32 1e-05, %v1353_v49 }
 0xf41   :  { %v1354_v52 = vadd.f32 1e-05, %v1352_v50 }
 0xf42   :  { %3431 = vrsqrt.f32 %v1355_v51 }
 0xf43   :  { %3433 = vrsqrt.f32 %v1354_v52 }
 0xf4c   :  { %v3432_v55 = vpop.eup %3431 }
 0xf4d   :  { %v3434_v57 = vpop.eup %3433  ;;  %v1359_v58 = vmul.f32 %v3432_v55, %v1343_v30 }
 0xf4e   :  { %v1358_v59 = vmul.f32 %v3434_v57, %v1342_v31 }
 0xf4f   :  { %v1365_v62 = vmul.f32 %v2725_v56, %v1359_v58 }
 0xf50   :  { %v1364_v63 = vmul.f32 %v2725_v56, %v1358_v59 }
 0xf51   :  { %v3834_v1 = vadd.f32 %v2726_v61, %v1365_v62 }
 0xf52   :  { %v3832_v0 = vadd.f32 %v2726_v61, %v1364_v63 }
 0xf54   :  { %3031 = vmatprep.mubr.msk.f32.mxu1 %vm34_vm0, %v3832_v0 }
 0xf55   :  { %3032 = vmatmul.mubr.msk.f32.vlgmr.msra.gmra.mrb[12].mxu1 %vm34_vm0, %v3834_v1 }
0x1028   :  { %v3033_v60 = vpop.f32.mrb[12].mxu1 }
0x1029   :  { %v3843_v3 = vadd.f32 %v3033_v60, %v2732_v2  ;;  %v1455_v4 = vpop.f32.mrb[13].mxu1 }
0x102a   :  { %v3845_v5 = vadd.f32 %v2732_v2, %v1455_v4 }
0x102c   :  { %3038 = vmatprep.mubr.msk.f32.mxu1 %vm172_vm1, %v3845_v5  ;;  %v3851_v6 = vpack.i.bf16 %v3843_v3, %v3845_v5 }
0x102e   :  { %3353 = vrot.lane.b32.xlu1 %v3851_v6, %s3505_s1  ;;  %3348 = vrot.lane.b32.xlu0 %v3851_v6, %s3506_s22 }
0x1032   :  { %1664 = vrot.lane.b32.xlu1 %v3845_v5, %s3507_s23 }
0x1036   :  { %1666 = vrot.lane.b32.xlu1 %v3843_v3, %s3507_s23 }
0x10a0   :  { %v3354_v7 = vpop.permute.xlu1 %3353  ;;  %v3349_v8 = vpop.permute.xlu0 %3348 }
0x10a1   :  { %v3356_v9 = vunpack.i.h.bf16 %v3354_v7  ;;  %v3355_v10 = vunpack.i.l.bf16 %v3354_v7  ;;  %v3351_v11 = vunpack.i.h.bf16 %v3349_v8  ;;  %v3350_v12 = vunpack.i.l.bf16 %v3349_v8 }
0x10a3   :  { %v3219_v13 = vpack.c.bf16 %v3351_v11, %v3350_v12  ;;  %v3229_v40 = vpack.c.bf16 %v3356_v9, %v3355_v10 }
0x10a4   :  { %v1665_v14 = vpop.permute.xlu1 %1664 }
0x10a5   :  { %3221 = vmatprep.subr.msk.bf16.mxu1 %vm3625_vm2, %v3219_v13 }
0x10a6   :  { %3224 = vmatpush3.bf16.xpose.msk.msra.mxu1 %vm3625_vm2, %v3219_v13 }
0x10a7   :  { %3231 = vmatprep.subr.msk.bf16.mxu1 %vm3625_vm2, %v3229_v40 }
0x10a8   :  { %v1667_v38 = vpop.permute.xlu1 %1666 }
0x10ad   :  { %3039 = vmatmul.mubr.msk.f32.vlgmr.msra.gmra.mrb[14].mxu1 %vm172_vm1, %v3843_v3 }
0x10ae   :  { %3234 = vmatpush3.bf16.xpose.msk.msra.mxu1 %vm3625_vm2, %v3229_v40  ;;  %3052 = vmatprep.mubr.msk.f32.mxu1 %vm172_vm1, %v1665_v14 }
0x10b5   :  { %3053 = vmatmul.mubr.msk.f32.vlgmr.msra.gmra.mrb[16].mxu1 %vm172_vm1, %v1667_v38 }
0x1180   :  { %v3040_v15 = vpop.f32.mrb[14].mxu1 }
0x1181   :  { %v1550_v16 = vadd.f32 %v3040_v15, %v3644_v53  ;;  %v1544_v17 = vpop.f32.mrb[15].mxu1 }
0x1182   :  { %v1545_v18 = vadd.f32 %v1544_v17, %v3649_v54 }
0x1183   :  { %v1556_v19 = vsel %vm256_vm3, %v1550_v16, -inf }
0x1184   :  { %1557 = vmax.xlane.f32.xlu1 %v1556_v19  ;;  %v1553_v20 = vsel %vm256_vm3, %v1545_v18, -inf }
0x1185   :  { %1554 = vmax.xlane.f32.xlu0 %v1553_v20  ;;  %v3479_v20 = vld [vmem:[%s4061_s2 + $0x8] sm:$0xff] }
0x1188   :  { %v3054_v21 = vpop.f32.mrb[16].mxu1 }
0x1189   :  { %v1746_v22 = vpop.f32.mrb[17].mxu1  ;;  %v1752_v24 = vadd.f32 %v3054_v21, %v3644_v53 }
0x118a   :  { %v1747_v23 = vadd.f32 %v1746_v22, %v3649_v54 }
0x118b   :  { %v1758_v26 = vsel %vm256_vm3, %v1752_v24, -inf }
0x118c   :  { %v1755_v25 = vsel %vm256_vm3, %v1747_v23, -inf }
0x118d   :  { %1756 = vmax.xlane.f32.xlu0 %v1755_v25 }
0x1191   :  { %1759 = vmax.xlane.f32.xlu0 %v1758_v26 }
0x1211   :  { %v1558_v27 = vpop.xlane.xlu1 %1557 }
0x1212   :  { %v1560_v28 = vsub.f32 %v1550_v16, %v1558_v27  ;;  %v1555_v29 = vpop.xlane.xlu0 %1554 }
0x1213   :  { %v1559_v35 = vsub.f32 %v1545_v18, %v1555_v29 }
0x1214   :  { %v1563_v33 = vmul.f32 1.442695, %v1560_v28 }
0x1215   :  { %v1561_v30 = vmul.f32 1.442695, %v1559_v35 }
0x1216   :  { %3435 = vpow2.f32 %v1563_v33 }
0x1217   :  { %3437 = vpow2.f32 %v1561_v30 }
0x121a   :  { %v1757_v31 = vpop.xlane.xlu0 %1756 }
0x121b   :  { %v1761_v32 = vsub.f32 %v1747_v23, %v1757_v31  ;;  %v3480_v23 = vld [vmem:[%s4061_s2] sm:$0xff] }
0x121d   :  { %v1763_v34 = vmul.f32 1.442695, %v1761_v32 }
0x121e   :  { %v1760_v54 = vpop.xlane.xlu0 %1759 }
0x121f   :  { %3439 = vpow2.f32 %v1763_v34  ;;  %v1762_v53 = vsub.f32 %v1752_v24, %v1760_v54 }
0x1220   :  { %v3436_v36 = vpop.eup %3435 }
0x1221   :  { %v3438_v37 = vpop.eup %3437  ;;  %v1765_v39 = vmul.f32 1.442695, %v1762_v53  ;;  %v1568_v42 = vsel %vm256_vm3, %v3436_v36, 0.0 }
0x1222   :  { %1569 = vadd.xlane.f32.xlu1 %v1568_v42  ;;  %v1565_v43 = vsel %vm256_vm3, %v3438_v37, 0.0 }
0x1223   :  { %3441 = vpow2.f32 %v1765_v39  ;;  %1566 = vadd.xlane.f32.xlu0 %v1565_v43 }
0x1229   :  { %v3440_v44 = vpop.eup %3439 }
0x122a   :  { %v1767_v45 = vsel %vm256_vm3, %v3440_v44, 0.0 }
0x122b   :  { %1768 = vadd.xlane.f32.xlu0 %v1767_v45 }
0x122d   :  { %v3442_v46 = vpop.eup %3441 }
0x122e   :  { %v1770_v47 = vsel %vm256_vm3, %v3442_v46, 0.0 }
0x122f   :  { %1771 = vadd.xlane.f32.xlu1 %v1770_v47 }
0x1240   :  { %3363 = vrot.lane.b32.xlu1 %v3851_v6, %s3508_s28 }
0x1241   :  { %3358 = vrot.lane.b32.xlu0 %v3851_v6, %s3509_s29 }
0x1244   :  { %3368 = vrot.lane.b32.xlu1 %v3851_v6, %s3510_s30 }
0x1245   :  { %1876 = vrot.lane.b32.xlu0 %v3843_v3, %s3511_s0 }
0x1248   :  { %1874 = vrot.lane.b32.xlu1 %v3845_v5, %s3511_s0 }
0x12af   :  { %v1570_v41 = vpop.xlane.xlu1 %1569 }
0x12b0   :  { %v1567_v49 = vpop.xlane.xlu0 %1566 }
0x12b1   :  { %3443 = vrcp.f32 %v1567_v49 }
0x12b2   :  { %3445 = vrcp.f32 %v1570_v41 }
0x12b8   :  { %v1769_v50 = vpop.xlane.xlu0 %1768 }
0x12b9   :  { %3447 = vrcp.f32 %v1769_v50 }
0x12bb   :  { %v3444_v51 = vpop.eup %3443 }
0x12bc   :  { %v1772_v52 = vpop.xlane.xlu1 %1771  ;;  %v3359_v55 = vpop.permute.xlu0 %3358  ;;  %v1572_v56 = vmul.f32 %v3444_v51, %v3438_v37 }
0x12bd   :  { %3449 = vrcp.f32 %v1772_v52  ;;  %v3361_v57 = vunpack.i.h.bf16 %v3359_v55  ;;  %v3360_v58 = vunpack.i.l.bf16 %v3359_v55  ;;  %v3446_v61 = vpop.eup %3445 }
0x12be   :  { %3045 = vmatprep.mubr.msk.f32.mxu0 %vm256_vm3, %v1572_v56  ;;  %v1574_v4 = vmul.f32 %v3446_v61, %v3436_v36 }
0x12bf   :  { %v3225_v59 = vpack.c.bf16 %v3361_v57, %v3360_v58 }
0x12c0   :  { %v3364_v62 = vpop.permute.xlu1 %3363  ;;  %v1877_v38 = vpop.permute.xlu0 %1876 }
0x12c1   :  { %v3366_v63 = vunpack.i.h.bf16 %v3364_v62  ;;  %v3365_v2 = vunpack.i.l.bf16 %v3364_v62  ;;  %3226 = vmatprep.subr.bf16.mxu0 %v3225_v59 }
0x12c2   :  { %3228 = vmatpush3.bf16.msra.mxu0 %v3225_v59 }
0x12c3   :  { %v3448_v60 = vpop.eup %3447  ;;  %v3235_v7 = vpack.c.bf16 %v3366_v63, %v3365_v2 }
0x12c4   :  { %v3369_v8 = vpop.permute.xlu1 %3368  ;;  %v1774_v9 = vmul.f32 %v3448_v60, %v3440_v44 }
0x12c5   :  { %v3371_v10 = vunpack.i.h.bf16 %v3369_v8  ;;  %v3370_v11 = vunpack.i.l.bf16 %v3369_v8  ;;  %3046 = vmatmul.mubr.msk.f32.vlgmr.msra.gmra.mrb[12].mxu0 %vm256_vm3, %v1574_v4  ;;  %3236 = vmatprep.subr.bf16.mxu0 %v3235_v7 }
0x12c6   :  { %3238 = vmatpush3.bf16.msra.mxu0 %v3235_v7  ;;  %3059 = vmatprep.mubr.msk.f32.mxu0 %vm256_vm3, %v1774_v9 }
0x12c7   :  { %v3450_v12 = vpop.eup %3449  ;;  %v3239_v13 = vpack.c.bf16 %v3371_v10, %v3370_v11 }
0x12c8   :  { %v1776_v40 = vmul.f32 %v3450_v12, %v3442_v46  ;;  %v1875_v14 = vpop.permute.xlu1 %1874 }
0x12c9   :  { %3241 = vmatprep.subr.msk.bf16.mxu0 %vm3625_vm2, %v3239_v13 }
0x12ca   :  { %3060 = vmatmul.mubr.msk.f32.vlgmr.msra.gmra.mrb[14].mxu0 %vm256_vm3, %v1776_v40 }
0x12cb   :  { %3066 = vmatprep.mubr.msk.f32.mxu0 %vm172_vm1, %v1875_v14 }
0x12cf   :  { %3244 = vmatpush3.bf16.xpose.msk.msra.mxu0 %vm3625_vm2, %v3239_v13 }
0x12d6   :  { %3067 = vmatmul.mubr.msk.f32.vlgmr.msra.gmra.mrb[16].mxu0 %vm172_vm1, %v1877_v38 }
0x1398   :  { %v3047_v15 = vpop.f32.mrb[12].mxu0 }
0x1399   :  { %1663 = vst.msk [vmem:[#allocation2 + $0x8] sm:$0xff] %vm172_vm1, %v3047_v15  ;;  %v1653_v16 = vpop.f32.mrb[13].mxu0 }
0x139a   :  { %1662 = vst.msk [vmem:[#allocation2] sm:$0xff] %vm172_vm1, %v1653_v16 }
0x139d   :  { %v3907_v17 = vpop.f32.mrb[14].mxu0 }
0x139e   :  { %v3909_v18 = vpop.f32.mrb[15].mxu0 }
0x13a9   :  { %v3068_v19 = vpop.f32.mrb[16].mxu0 }
0x13aa   :  { %v1962_v21 = vadd.f32 %v3479_v20, %v3068_v19  ;;  %v1956_v22 = vpop.f32.mrb[17].mxu0 }
0x13ab   :  { %v1957_v24 = vadd.f32 %v3480_v23, %v1956_v22 }
0x13ac   :  { %v1968_v25 = vsel %vm256_vm3, %v1962_v21, -inf }
0x13ad   :  { %1969 = vmax.xlane.f32.xlu0 %v1968_v25  ;;  %v1965_v26 = vsel %vm256_vm3, %v1957_v24, -inf }
0x13ae   :  { %1966 = vmax.xlane.f32.xlu1 %v1965_v26  ;;  %v2761_v26 = vld [vmem:[%s4063_s4 + $0x30] sm:$0xff] }
0x13bf   :  { %3373 = vrot.lane.b32.xlu1 %v3851_v6, %s3512_s9 }
0x13c3   :  { %2084 = vrot.lane.b32.xlu1 %v3845_v5, %s3513_s10 }
0x13c7   :  { %2086 = vrot.lane.b32.xlu1 %v3843_v3, %s3513_s10 }
0x143a   :  { %v1970_v27 = vpop.xlane.xlu0 %1969 }
0x143b   :  { %v1972_v28 = vsub.f32 %v1962_v21, %v1970_v27  ;;  %v1967_v29 = vpop.xlane.xlu1 %1966  ;;  %v2762_v27 = vld [vmem:[%s4063_s4 + $0x38] sm:$0xff] }
0x143c   :  { %v1971_v35 = vsub.f32 %v1957_v24, %v1967_v29  ;;  %v2760_v24 = vld [vmem:[%s4063_s4 + $0x28] sm:$0xff] }
0x143d   :  { %v1975_v33 = vmul.f32 1.442695, %v1972_v28  ;;  %v3263_v28 = vpack.c.bf16 %v2762_v27, %v2761_v26 }
0x143e   :  { %v1973_v30 = vmul.f32 1.442695, %v1971_v35 }
0x143f   :  { %3451 = vpow2.f32 %v1975_v33  ;;  %v3374_v31 = vpop.permute.xlu1 %3373 }
0x1440   :  { %v3376_v32 = vunpack.i.h.bf16 %v3374_v31  ;;  %v3375_v34 = vunpack.i.l.bf16 %v3374_v31  ;;  %3453 = vpow2.f32 %v1973_v30 }
0x1442   :  { %v3245_v54 = vpack.c.bf16 %v3376_v32, %v3375_v34  ;;  %v2764_v34 = vld [vmem:[%s4066_s7 + $0x9] ss:$0 sm:$0xff] }
0x1443   :  { %v2085_v50 = vpop.permute.xlu1 %2084 }
0x1444   :  { %3246 = vmatprep.subr.bf16.mxu1 %v3245_v54 }
0x1445   :  { %3248 = vmatpush3.bf16.msra.mxu1 %v3245_v54 }
0x1447   :  { %v2087_v51 = vpop.permute.xlu1 %2086 }
0x1449   :  { %v3452_v53 = vpop.eup %3451 }
0x144a   :  { %v1980_v5 = vsel %vm256_vm3, %v3452_v53, 0.0  ;;  %v3454_v36 = vpop.eup %3453 }
0x144b   :  { %1981 = vadd.xlane.f32.xlu0 %v1980_v5  ;;  %v1977_v3 = vsel %vm256_vm3, %v3454_v36, 0.0 }
0x144f   :  { %1978 = vadd.xlane.f32.xlu0 %v1977_v3 }
0x1465   :  { %3378 = vrot.lane.b32.xlu0 %v3851_v6, %s3514_s11 }
0x14d8   :  { %v1982_v37 = vpop.xlane.xlu0 %1981 }
0x14d9   :  { %3455 = vrcp.f32 %v1982_v37 }
0x14dc   :  { %v1979_v39 = vpop.xlane.xlu0 %1978 }
0x14dd   :  { %3457 = vrcp.f32 %v1979_v39 }
0x14e0   :  { %v3379_v42 = vpop.permute.xlu0 %3378 }
0x14e1   :  { %v3381_v43 = vunpack.i.h.bf16 %v3379_v42  ;;  %v3380_v44 = vunpack.i.l.bf16 %v3379_v42 }
0x14e3   :  { %v3249_v45 = vpack.c.bf16 %v3381_v43, %v3380_v44  ;;  %v3456_v46 = vpop.eup %3455 }
0x14e4   :  { %v1986_v41 = vmul.f32 %v3456_v46, %v3452_v53 }
0x14e5   :  { %3251 = vmatprep.subr.msk.bf16.mxu1 %vm3625_vm2, %v3249_v45 }
0x14e7   :  { %v3458_v47 = vpop.eup %3457 }
0x14e8   :  { %v1984_v49 = vmul.f32 %v3458_v47, %v3454_v36 }
0x14ea   :  { %3073 = vmatprep.mubr.msk.f32.mxu1 %vm256_vm3, %v1984_v49 }
0x14eb   :  { %3074 = vmatmul.mubr.msk.f32.vlgmr.msra.gmra.mrb[18].mxu1 %vm256_vm3, %v1986_v41 }
0x14ec   :  { %3254 = vmatpush3.bf16.xpose.msk.msra.mxu1 %vm3625_vm2, %v3249_v45  ;;  %3080 = vmatprep.mubr.msk.f32.mxu1 %vm172_vm1, %v2085_v50 }
0x14f3   :  { %3081 = vmatmul.mubr.msk.f32.vlgmr.msra.gmra.mrb[20].mxu1 %vm172_vm1, %v2087_v51 }
0x15be   :  { %v3075_v52 = vpop.f32.mrb[18].mxu1 }
0x15bf   :  { %v2065_v55 = vpop.f32.mrb[19].mxu1 }
0x15c6   :  { %v3082_v56 = vpop.f32.mrb[20].mxu1 }
0x15c7   :  { %v2172_v57 = vadd.f32 %v3479_v20, %v3082_v56  ;;  %v2166_v58 = vpop.f32.mrb[21].mxu1  ;;  %v2773_v56 = vld [vmem:[%s4064_s5 + $0x30] sm:$0xff] }
0x15c8   :  { %v2167_v59 = vadd.f32 %v3480_v23, %v2166_v58 }
0x15c9   :  { %v2178_v61 = vsel %vm256_vm3, %v2172_v57, -inf }
0x15ca   :  { %2179 = vmax.xlane.f32.xlu0 %v2178_v61  ;;  %v2175_v62 = vsel %vm256_vm3, %v2167_v59, -inf }
0x15cb   :  { %2176 = vmax.xlane.f32.xlu1 %v2175_v62 }
0x15dc   :  { %3383 = vrot.lane.b32.xlu1 %v3851_v6, %s3515_s12 }
0x15e0   :  { %1868 = vrot.lane.b32.xlu1 %v3907_v17, %s3516_s13 }
0x15e4   :  { %2076 = vrot.lane.b32.xlu1 %v2065_v55, %s3517_s14 }
0x15e8   :  { %2078 = vrot.lane.b32.xlu1 %v3075_v52, %s3517_s14  ;;  %v2772_v52 = vld [vmem:[%s4064_s5 + $0x28] sm:$0xff] }
0x1657   :  { %v2180_v48 = vpop.xlane.xlu0 %2179 }
0x1658   :  { %v2182_v63 = vsub.f32 %v2172_v57, %v2180_v48  ;;  %v2177_v2 = vpop.xlane.xlu1 %2176  ;;  %v2774_v57 = vld [vmem:[%s4064_s5 + $0x38] sm:$0xff] }
0x1659   :  { %v2181_v60 = vsub.f32 %v2167_v59, %v2177_v2  ;;  %v3271_v58 = vpack.c.bf16 %v2774_v57, %v2773_v56 }
0x165a   :  { %v2185_v4 = vmul.f32 1.442695, %v2182_v63 }
0x165b   :  { %v2183_v7 = vmul.f32 1.442695, %v2181_v60 }
0x165c   :  { %v3384_v8 = vpop.permute.xlu1 %3383 }
0x165d   :  { %3459 = vpow2.f32 %v2183_v7  ;;  %v3386_v9 = vunpack.i.h.bf16 %v3384_v8  ;;  %v3385_v10 = vunpack.i.l.bf16 %v3384_v8  ;;  %v2770_v8 = vld [vmem:[%s4066_s7 + $0xb] ss:$0 sm:$0xff] }
0x165e   :  { %3461 = vpow2.f32 %v2185_v4  ;;  %v2769_v4 = vld [vmem:[%s4066_s7 + $0xa] ss:$0 sm:$0xff] }
0x165f   :  { %v3255_v11 = vpack.c.bf16 %v3386_v9, %v3385_v10 }
0x1660   :  { %v1869_v6 = vpop.permute.xlu1 %1868 }
0x1661   :  { %1873 = vst.msk [vmem:[#allocation2 + $0x8] sm:$0xff] %vm576_vm4, %v1869_v6  ;;  %3256 = vmatprep.subr.bf16.mxu0 %v3255_v11 }
0x1662   :  { %3258 = vmatpush3.bf16.msra.mxu0 %v3255_v11 }
0x1664   :  { %v2077_v12 = vpop.permute.xlu1 %2076 }
0x1667   :  { %v3460_v13 = vpop.eup %3459 }
0x1668   :  { %v2079_v40 = vpop.permute.xlu1 %2078  ;;  %v2187_v14 = vsel %vm256_vm3, %v3460_v13, 0.0  ;;  %v3462_v38 = vpop.eup %3461 }
0x1669   :  { %2083 = vst.msk [vmem:[#allocation2 + $0x8] sm:$0xff] %vm787_vm5, %v2079_v40  ;;  %2188 = vadd.xlane.f32.xlu0 %v2187_v14  ;;  %v2190_v15 = vsel %vm256_vm3, %v3462_v38, 0.0  ;;  %v2779_v40 = vld [vmem:[%s4065_s6 + $0x40] sm:$0xff]  ;;  %v2780_v14 = vld [vmem:[%s4065_s6 + $0x48] sm:$0xff] }
0x166d   :  { %2191 = vadd.xlane.f32.xlu0 %v2190_v15  ;;  %v2781_v15 = vld [vmem:[%s4065_s6 + $0x50] sm:$0xff] }
0x1683   :  { %1866 = vrot.lane.b32.xlu0 %v3909_v18, %s3516_s13  ;;  %v2759_v18 = vld [vmem:[%s4063_s4 + $0x20] sm:$0xff] }
0x1684   :  { %v3259_v25 = vpack.c.bf16 %v2760_v24, %v2759_v18  ;;  %v2776_v24 = vld [vmem:[%s4066_s7 + $0xc] ss:$0 sm:$0xff] }
0x1686   :  { %3260 = vmatprep.subr.bf16.mxu0 %v3259_v25 }
0x16f6   :  { %v2189_v16 = vpop.xlane.xlu0 %2188 }
0x16f7   :  { %3463 = vrcp.f32 %v2189_v16  ;;  %v2782_v16 = vld [vmem:[%s4065_s6 + $0x58] sm:$0xff] }
0x16fa   :  { %v2192_v17 = vpop.xlane.xlu0 %2191 }
0x16fb   :  { %3465 = vrcp.f32 %v2192_v17  ;;  %v3279_v17 = vpack.c.bf16 %v2782_v16, %v2781_v15 }
0x16fe   :  { %v1867_v19 = vpop.permute.xlu0 %1866 }
0x16ff   :  { %1872 = vst.msk [vmem:[#allocation2] sm:$0xff] %vm576_vm4, %v1867_v19  ;;  %v2783_v19 = vld [vmem:[%s4065_s6 + $0x60] sm:$0xff] }
0x1700   :  { %2082 = vst.msk [vmem:[#allocation2] sm:$0xff] %vm787_vm5, %v2077_v12 }
0x1701   :  { %v3464_v20 = vpop.eup %3463 }
0x1702   :  { %v2194_v21 = vmul.f32 %v3464_v20, %v3460_v13  ;;  %v2784_v20 = vld [vmem:[%s4065_s6 + $0x68] sm:$0xff] }
0x1704   :  { %3087 = vmatprep.mubr.msk.f32.mxu0 %vm256_vm3, %v2194_v21  ;;  %v3283_v21 = vpack.c.bf16 %v2784_v20, %v2783_v19 }
0x1705   :  { %v3466_v22 = vpop.eup %3465 }
0x1706   :  { %v2196_v23 = vmul.f32 %v3466_v22, %v3462_v38  ;;  %v3275_v38 = vpack.c.bf16 %v2780_v14, %v2779_v40  ;;  %v2785_v22 = vld [vmem:[%s4065_s6 + $0x70] sm:$0xff] }
0x1708   :  { %3088 = vmatmul.mubr.msk.f32.vlgmr.msra.gmra.mrb[18].mxu0 %vm256_vm3, %v2196_v23  ;;  %v2786_v23 = vld [vmem:[%s4065_s6 + $0x78] sm:$0xff] }
0x1709   :  { %3262 = vmatpush3.bf16.msra.mxu0 %v3259_v25  ;;  %v3287_v18 = vpack.c.bf16 %v2786_v23, %v2785_v22 }
0x170a   :  { %3264 = vmatprep.subr.bf16.mxu0 %v3263_v28 }
0x170d   :  { %3266 = vmatpush3.bf16.msra.mxu0 %v3263_v28 }
0x170e   :  { %3276 = vmatprep.subr.bf16.mxu0 %v3275_v38 }
0x17db   :  { %v3089_v29 = vpop.f32.mrb[18].mxu0 }
0x17dc   :  { %2288 = vrot.lane.b32.xlu1 %v3089_v29, %s3518_s25  ;;  %v2275_v35 = vpop.f32.mrb[19].mxu0 }
0x17dd   :  { %2286 = vrot.lane.b32.xlu0 %v2275_v35, %s3518_s25 }
0x184e   :  { %v2289_v33 = vpop.permute.xlu1 %2288 }
0x184f   :  { %2293 = vst.msk [vmem:[#allocation2 + $0x8] sm:$0xff] %vm998_vm6, %v2289_v33  ;;  %v2287_v30 = vpop.permute.xlu0 %2286 }
0x1850   :  { %2292 = vst.msk [vmem:[#allocation2] sm:$0xff] %vm998_vm6, %v2287_v30 }
0x1856   :  { %v2295_v32 = vld [vmem:[#allocation2 + $0x8] sm:$0xff] }
0x1857   :  { %v2294_v31 = vld [vmem:[#allocation2] sm:$0xff] }
0x1858   :  { %3098 = vmatprep.mubr.msk.f32.mxu0 %vm34_vm0, %v2294_v31 }
0x1859   :  { %3099 = vmatmul.mubr.msk.f32.vlgmr.msra.gmra.mrb[20].mxu0 %vm34_vm0, %v2295_v32 }
0x185a   :  { %3278 = vmatpush3.bf16.msra.mxu0 %v3275_v38 }
0x185b   :  { %3280 = vmatprep.subr.bf16.mxu0 %v3279_v17 }
0x185e   :  { %3282 = vmatpush3.bf16.msra.mxu0 %v3279_v17 }
0x185f   :  { %3284 = vmatprep.subr.bf16.mxu0 %v3283_v21 }
0x1862   :  { %3286 = vmatpush3.bf16.msra.mxu0 %v3283_v21 }
0x1863   :  { %3288 = vmatprep.subr.bf16.mxu0 %v3287_v18 }
0x1866   :  { %3290 = vmatpush3.bf16.msra.mxu0 %v3287_v18 }
0x192c   :  { %v3100_v54 = vpop.f32.mrb[20].mxu0 }
0x192d   :  { %v2384_v53 = vadd.f32 %v3100_v54, %v2764_v34  ;;  %v2378_v5 = vpop.f32.mrb[21].mxu0 }
0x192e   :  { %v2379_v36 = vadd.f32 %v2764_v34, %v2378_v5 }
0x192f   :  { %v2388_v3 = vadd.f32 %v2384_v53, %v3834_v1 }
0x1930   :  { %v2387_v37 = vadd.f32 %v2379_v36, %v3832_v0  ;;  %v2771_v0 = vld [vmem:[%s4064_s5 + $0x20] sm:$0xff]  ;;  %v2788_v36 = vld [vmem:[%s4066_s7 + $0xd] ss:$0 sm:$0xff] }
0x1931   :  { %v2394_v39 = vsel %vm34_vm0, %v2388_v3, 0.0  ;;  %v3267_v55 = vpack.c.bf16 %v2772_v52, %v2771_v0 }
0x1932   :  { %2395 = vadd.xlane.f32.xlu1 %v2394_v39  ;;  %v2391_v42 = vsel %vm34_vm0, %v2387_v37, 0.0 }
0x1933   :  { %2392 = vadd.xlane.f32.xlu0 %v2391_v42  ;;  %3268 = vmatprep.subr.bf16.mxu1 %v3267_v55 }
0x1934   :  { %3270 = vmatpush3.bf16.msra.mxu1 %v3267_v55 }
0x1935   :  { %3272 = vmatprep.subr.bf16.mxu1 %v3271_v58 }
0x1938   :  { %3274 = vmatpush3.bf16.msra.mxu1 %v3271_v58 }
0x19bf   :  { %v2396_v43 = vpop.xlane.xlu1 %2395 }
0x19c0   :  { %v2398_v44 = vmul.f32 0.03125, %v2396_v43  ;;  %v2393_v45 = vpop.xlane.xlu0 %2392 }
0x19c1   :  { %v2397_v46 = vmul.f32 0.03125, %v2393_v45 }
0x19c2   :  { %v2400_v47 = vsub.f32 %v2388_v3, %v2398_v44 }
0x19c3   :  { %v2399_v49 = vsub.f32 %v2387_v37, %v2397_v46 }
0x19c4   :  { %v2402_v51 = vmul.f32 %v2400_v47, %v2400_v47 }
0x19c5   :  { %v2401_v41 = vmul.f32 %v2399_v49, %v2399_v49 }
0x19c6   :  { %v2406_v1 = vsel %vm34_vm0, %v2402_v51, 0.0 }
0x19c7   :  { %v2403_v50 = vsel %vm34_vm0, %v2401_v41, 0.0 }
0x19c8   :  { %2404 = vadd.xlane.f32.xlu0 %v2403_v50 }
0x19cc   :  { %2407 = vadd.xlane.f32.xlu0 %v2406_v1 }
0x1a55   :  { %v2405_v59 = vpop.xlane.xlu0 %2404 }
0x1a56   :  { %v2409_v61 = vmul.f32 0.03125, %v2405_v59 }
0x1a58   :  { %v2411_v62 = vadd.f32 1e-05, %v2409_v61 }
0x1a59   :  { %v2408_v48 = vpop.xlane.xlu0 %2407 }
0x1a5a   :  { %3467 = vrsqrt.f32 %v2411_v62  ;;  %v2410_v63 = vmul.f32 0.03125, %v2408_v48 }
0x1a5c   :  { %v2412_v2 = vadd.f32 1e-05, %v2410_v63 }
0x1a5e   :  { %3469 = vrsqrt.f32 %v2412_v2  ;;  %v2793_v2 = vld [vmem:[%s4066_s7 + $0xe] ss:$0 sm:$0xff] }
0x1a64   :  { %v3468_v60 = vpop.eup %3467 }
0x1a65   :  { %v2415_v7 = vmul.f32 %v3468_v60, %v2399_v49 }
0x1a67   :  { %v2421_v9 = vmul.f32 %v2769_v4, %v2415_v7 }
0x1a68   :  { %v3470_v10 = vpop.eup %3469 }
0x1a69   :  { %v2416_v11 = vmul.f32 %v3470_v10, %v2400_v47  ;;  %v2427_v6 = vadd.f32 %v2770_v8, %v2421_v9 }
0x1a6b   :  { %v2422_v12 = vmul.f32 %v2769_v4, %v2416_v11  ;;  %3109 = vmatprep.mubr.msk.f32.mxu1 %vm34_vm0, %v2427_v6 }
0x1a6d   :  { %v2428_v13 = vadd.f32 %v2770_v8, %v2422_v12  ;;  %v2794_v8 = vld [vmem:[%s4066_s7 + $0xf] ss:$0 sm:$0xff] }
0x1a6f   :  { %3110 = vmatmul.mubr.msk.f32.vlgmr.msra.gmra.mrb[22].mxu1 %vm34_vm0, %v2428_v13 }
0x1b42   :  { %v3111_v25 = vpop.f32.mrb[22].mxu1 }
0x1b43   :  { %v2517_v26 = vadd.f32 %v3111_v25, %v2776_v24  ;;  %v2511_v27 = vpop.f32.mrb[23].mxu1 }
0x1b44   :  { %v2512_v28 = vadd.f32 %v2776_v24, %v2511_v27 }
0x1b45   :  { %v2523_v29 = vmul.f32 0.70710677, %v2517_v26  ;;  %v2521_v54 = vmul.f32 0.5, %v2517_v26 }
0x1b46   :  { %v2522_v35 = vmul.f32 0.70710677, %v2512_v28  ;;  %v2520_v32 = vmul.f32 0.5, %v2512_v28 }
0x1b47   :  { %3471 = verf.f32 %v2523_v29 }
0x1b48   :  { %3473 = verf.f32 %v2522_v35 }
0x1b51   :  { %v3472_v33 = vpop.eup %3471 }
0x1b52   :  { %v3474_v30 = vpop.eup %3473  ;;  %v2527_v31 = vadd.f32 1.0, %v3472_v33 }
0x1b53   :  { %v2526_v34 = vadd.f32 1.0, %v3474_v30 }
0x1b54   :  { %v2529_v5 = vmul.f32 %v2527_v31, %v2521_v54 }
0x1b55   :  { %v2528_v53 = vmul.f32 %v2526_v34, %v2520_v32 }
0x1b57   :  { %3128 = vmatprep.mubr.msk.f32.mxu0 %vm1248_vm7, %v2528_v53 }
0x1b58   :  { %3129 = vmatmul.mubr.msk.f32.vlgmr.msra.gmra.mrb[22].mxu0 %vm1248_vm7, %v2529_v5 }
0x1c2b   :  { %v3130_v3 = vpop.f32.mrb[22].mxu0 }
0x1c2c   :  { %v2622_v37 = vadd.f32 %v3130_v3, %v2788_v36  ;;  %v2616_v39 = vpop.f32.mrb[23].mxu0 }
0x1c2d   :  { %v2617_v42 = vadd.f32 %v2788_v36, %v2616_v39 }
0x1c2e   :  { %v2626_v43 = vadd.f32 %v2622_v37, %v2428_v13 }
0x1c2f   :  { %v2625_v44 = vadd.f32 %v2617_v42, %v2427_v6 }
0x1c30   :  { %v2632_v45 = vsel %vm34_vm0, %v2626_v43, 0.0 }
0x1c31   :  { %2633 = vadd.xlane.f32.xlu1 %v2632_v45  ;;  %v2629_v46 = vsel %vm34_vm0, %v2625_v44, 0.0 }
0x1c32   :  { %2630 = vadd.xlane.f32.xlu0 %v2629_v46 }
0x1cbe   :  { %v2634_v47 = vpop.xlane.xlu1 %2633 }
0x1cbf   :  { %v2636_v49 = vmul.f32 0.03125, %v2634_v47  ;;  %v2631_v41 = vpop.xlane.xlu0 %2630 }
0x1cc0   :  { %v2635_v50 = vmul.f32 0.03125, %v2631_v41 }
0x1cc1   :  { %v2638_v51 = vsub.f32 %v2626_v43, %v2636_v49 }
0x1cc2   :  { %v2637_v1 = vsub.f32 %v2625_v44, %v2635_v50 }
0x1cc3   :  { %v2640_v0 = vmul.f32 %v2638_v51, %v2638_v51 }
0x1cc4   :  { %v2639_v52 = vmul.f32 %v2637_v1, %v2637_v1 }
0x1cc5   :  { %v2644_v55 = vsel %vm34_vm0, %v2640_v0, 0.0 }
0x1cc6   :  { %2645 = vadd.xlane.f32.xlu1 %v2644_v55  ;;  %v2641_v56 = vsel %vm34_vm0, %v2639_v52, 0.0 }
0x1cc7   :  { %2642 = vadd.xlane.f32.xlu0 %v2641_v56 }
0x1d53   :  { %v2646_v57 = vpop.xlane.xlu1 %2645 }
0x1d54   :  { %v2648_v58 = vmul.f32 0.03125, %v2646_v57  ;;  %v2643_v59 = vpop.xlane.xlu0 %2642 }
0x1d55   :  { %v2647_v61 = vmul.f32 0.03125, %v2643_v59 }
0x1d56   :  { %v2650_v62 = vadd.f32 1e-05, %v2648_v58 }
0x1d57   :  { %v2649_v48 = vadd.f32 1e-05, %v2647_v61 }
0x1d58   :  { %3475 = vrsqrt.f32 %v2650_v62 }
0x1d59   :  { %3477 = vrsqrt.f32 %v2649_v48 }
0x1d62   :  { %v3476_v63 = vpop.eup %3475 }
0x1d63   :  { %v3478_v60 = vpop.eup %3477  ;;  %v2654_v4 = vmul.f32 %v3476_v63, %v2638_v51 }
0x1d64   :  { %v2653_v7 = vmul.f32 %v3478_v60, %v2637_v1 }
0x1d65   :  { %v2660_v9 = vmul.f32 %v2793_v2, %v2654_v4 }
0x1d66   :  { %v2659_v10 = vmul.f32 %v2793_v2, %v2653_v7 }
0x1d67   :  { %v2666_v11 = vadd.f32 %v2794_v8, %v2660_v9 }
0x1d68   :  { %v2665_v6 = vadd.f32 %v2794_v8, %v2659_v10 }
0x1d69   :  { %2668 = vst.msk [vmem:[#allocation3 + $0x8] sm:$0xff] %vm34_vm0, %v2666_v11 }
0x1d6a   :  { %2667 = vst.msk [vmem:[#allocation3] sm:$0xff] %vm34_vm0, %v2665_v6 }
0x1d6b   :  { %3492 = shalt.err (!%p3489_p4)
}
0x1d6c   :  { %s3493_s5 = scalar_lea.hbm %s4067_s8, 256 }
0x1d6d   :  { %p3494_p5 = scmp.ne.s32.totalorder %s4067_s8, %s3493_s5  ;;  %p3497_p6 = scmp.lt.u32.totalorder %s3493_s5, %s4067_s8 }
0x1d6f   :  { %p3499_p7 = pnand %p3497_p6, %p3494_p5 }
0x1d71   :  { %3502 = shalt.err (!%p3499_p7)
}
0x1d72   :  { %s3520_s2 = smov 128  }
0x1d73   :  { %2680 = dma.vmem_to_hbm [thread:$0]  %s2675_s17, 256, %s4067_s8, [#allocation4], %s3520_s2, %s3520_s2, %s3516_s13  }
0x1d74   :  { %3503 = dma.done.wait [#allocation4], 256  }
0x1d75   :  { %3504 = vsyncadd [#allocation4], 4294967040 }
0x1d76   :  { %2684 = vsyncpa [#allocation4], 1 }

</bundles_post_ra>
